<compile_context>
chip_gen: v6e
topology: v6e:2x2x1
jax: 0.10.0
libtpu: 0.0.40
codegen_flags: <defaults>
</compile_context>

<pallas_src>
import functools

import jax
import jax.numpy as jnp
from jax.experimental import pallas as pl
from jax.experimental.pallas import tpu as pltpu


def _round_up(v, m):
    return (v + m - 1) // m * m


# ----------------------------------------------------------------------------
# Fused kernel: grid = (layer, edge_block); x resident in out_ref.
# ----------------------------------------------------------------------------
def _fused_gin_kernel(x0_ref, ea_ref, src_ref, dst_ref,
                      ew1_ref, eb1_ref, ew2_ref, eb2_ref,
                      cw1_ref, cb1_ref, cw2_ref, cb2_ref,
                      out_ref, agg_ref, *, eps: float):
    i = pl.program_id(0)               # conv layer (outer)
    j = pl.program_id(1)               # edge block (inner reduction)
    num_layers = pl.num_programs(0)
    num_blocks = pl.num_programs(1)
    n_pad, _ = out_ref.shape
    block_e = src_ref.shape[1]

    # first grid step: load initial node features into the resident output
    @pl.when((i == 0) & (j == 0))
    def _():
        out_ref[...] = x0_ref[...]

    # start of every layer: clear the scatter-add accumulator
    @pl.when(j == 0)
    def _():
        agg_ref[...] = jnp.zeros_like(agg_ref)

    # edge_transform MLP on this edge block: Linear(2H->H) -> relu -> Linear(H->H)
    # (recomputed per layer: O(H^2)/edge, cheap next to the O(N*H)/edge
    #  gather/scatter at real node counts; keeps edge features out of VMEM)
    t = jnp.dot(ea_ref[...], ew1_ref[...], preferred_element_type=jnp.float32)
    t = jnp.maximum(t + eb1_ref[...], 0.0)
    ea = jnp.dot(t, ew2_ref[...], preferred_element_type=jnp.float32) + eb2_ref[...]

    x = out_ref[...]                   # current node features (resident VMEM)

    # One (n_pad, block_e) iota feeds BOTH one-hot masks; src/dst stay
    # lane-major (1, block_e).  Padded / out-of-range indices (-1) give an
    # all-zero column and are silently dropped (differs from clamping gather).
    node_iota = jax.lax.broadcasted_iota(jnp.int32, (n_pad, block_e), 0)
    gather_t = (node_iota == src_ref[...]).astype(jnp.float32)  # [n,e]=(n==src[e])
    scatter = (node_iota == dst_ref[...]).astype(jnp.float32)   # [n,e]=(n==dst[e])

    # x[src] without materializing the (block_e, n_pad) layout: contract the
    # node axis of gather_t against the node axis of x (transposed-LHS matmul).
    x_src = jax.lax.dot_general(gather_t, x, (((0,), (0,)), ((), ())),
                                preferred_element_type=jnp.float32)  # (blockE, H)
    msg = jnp.maximum(x_src + ea, 0.0)                 # GINEConv.message (relu)
    agg_ref[...] += jnp.dot(scatter, msg,
                            preferred_element_type=jnp.float32)     # scatter_add

    # last edge block of the layer: conv.nn MLP, encoder relu, shortcut
    @pl.when(j == num_blocks - 1)
    def _():
        if eps == 0.0:                                 # static fold of (1+eps)*x
            out = agg_ref[...] + x
        else:
            out = agg_ref[...] + (1.0 + eps) * x
        w1 = cw1_ref[0]                                # (H, H) this layer's block
        b1 = cb1_ref[0]                                # (1, H)
        w2 = cw2_ref[0]
        b2 = cb2_ref[0]
        h = jnp.dot(out, w1, preferred_element_type=jnp.float32)
        h = jnp.maximum(h + b1, 0.0)
        h = jnp.dot(h, w2, preferred_element_type=jnp.float32) + b2
        # encoder activation after every conv except the last
        h = jnp.where(i < num_layers - 1, jnp.maximum(h, 0.0), h)
        out_ref[...] = h + x                           # short_cut residual


# ----------------------------------------------------------------------------
# Wrapper
# ----------------------------------------------------------------------------
def conditional_gin_encoder_forward(params, z, edge_index, edge_attr,
                                    num_convs=3, block_e=128):
    # node embedding lookup (glue, plain JAX)
    node_attr = params["node_emb"][z].astype(jnp.float32)            # (N, H)
    N, H = node_attr.shape
    E = edge_attr.shape[0]
    L = num_convs

    # pad nodes to a sublane multiple, edges to whole lane-dense blocks
    n_pad = max(_round_up(N, 8), 8)
    e_pad = max(_round_up(E, block_e), block_e)
    n_blocks = e_pad // block_e

    x0 = jnp.zeros((n_pad, H), jnp.float32).at[:N].set(node_attr)
    ea = jnp.zeros((e_pad, 2 * H), jnp.float32).at[:E].set(
        edge_attr.astype(jnp.float32))
    src = jnp.full((1, e_pad), -1, jnp.int32).at[0, :E].set(
        edge_index[0].astype(jnp.int32))
    dst = jnp.full((1, e_pad), -1, jnp.int32).at[0, :E].set(
        edge_index[1].astype(jnp.int32))

    const2 = lambda i, j: (0, 0)
    layer3 = lambda i, j: (i, 0, 0)

    grid_spec = pltpu.PrefetchScalarGridSpec(
        num_scalar_prefetch=0,
        grid=(L, n_blocks),
        in_specs=[
            pl.BlockSpec((n_pad, H), const2),                     # x0 (resident)
            pl.BlockSpec((block_e, 2 * H), lambda i, j: (j, 0)),  # edge_attr block
            pl.BlockSpec((1, block_e), lambda i, j: (0, j)),      # src block
            pl.BlockSpec((1, block_e), lambda i, j: (0, j)),      # dst block
            pl.BlockSpec((2 * H, H), const2),                     # edge_w1 (resident)
            pl.BlockSpec((1, H), const2),                         # edge_b1
            pl.BlockSpec((H, H), const2),                         # edge_w2
            pl.BlockSpec((1, H), const2),                         # edge_b2
            pl.BlockSpec((1, H, H), layer3),                      # conv_w1[layer]
            pl.BlockSpec((1, 1, H), layer3),                      # conv_b1[layer]
            pl.BlockSpec((1, H, H), layer3),                      # conv_w2[layer]
            pl.BlockSpec((1, 1, H), layer3),                      # conv_b2[layer]
        ],
        out_specs=pl.BlockSpec((n_pad, H), const2),               # resident x / out
        scratch_shapes=[pltpu.VMEM((n_pad, H), jnp.float32)],     # scatter-add acc
    )

    # explicit VMEM budget (resident tensors + double-buffered streamed blocks),
    # clamped below v7x's 64 MiB physical VMEM.
    itemsize = 4
    resident = n_pad * H * 3 + (2 * H) * H + H * H + 2 * H
    per_step = block_e * 2 * H + 2 * block_e + 2 * H * H + 2 * H
    vmem_limit = int(min(max(itemsize * (resident + 2 * per_step) * 2, 16 << 20),
                         64 << 20))

    flops = L * (6 * e_pad * H * H            # edge MLP (recomputed per layer)
                 + 4 * e_pad * n_pad * H      # gather + scatter matmuls
                 + 4 * n_pad * H * H)         # conv MLP
    bytes_accessed = itemsize * (2 * n_pad * H + e_pad * 2 * H + 2 * e_pad
                                 + 3 * H * H + 2 * H
                                 + 2 * L * H * H + 2 * L * H)

    out = pl.pallas_call(
        functools.partial(_fused_gin_kernel, eps=0.0),
        out_shape=jax.ShapeDtypeStruct((n_pad, H), jnp.float32),
        grid_spec=grid_spec,
        compiler_params=pltpu.CompilerParams(
            dimension_semantics=("arbitrary", "arbitrary"),
            vmem_limit_bytes=vmem_limit),
        cost_estimate=pl.CostEstimate(flops=int(flops), transcendentals=0,
                                      bytes_accessed=int(bytes_accessed)),
    )(x0, ea, src, dst,
      params["edge_w1"], params["edge_b1"].reshape(1, H),
      params["edge_w2"], params["edge_b2"].reshape(1, H),
      params["conv_w1"], params["conv_b1"].reshape(L, 1, H),
      params["conv_w2"], params["conv_b2"].reshape(L, 1, H))
    return out[:N]


# ----------------------------------------------------------------------------
# Pure-JAX reference (for correctness check)
# ----------------------------------------------------------------------------
def reference_forward(params, z, edge_index, edge_attr, num_convs=3):
    hp = jax.lax.Precision.HIGHEST
    relu = lambda v: jnp.maximum(v, 0.0)
    x = params["node_emb"][z].astype(jnp.float32)
    ea = relu(jnp.dot(edge_attr, params["edge_w1"], precision=hp)
              + params["edge_b1"])
    ea = jnp.dot(ea, params["edge_w2"], precision=hp) + params["edge_b2"]
    src, dst = edge_index[0], edge_index[1]
    N, H = x.shape
    for i in range(num_convs):
        msg = relu(x[src] + ea)
        agg = jnp.zeros((N, H), jnp.float32).at[dst].add(msg)
        out = agg + x
        h = relu(jnp.dot(out, params["conv_w1"][i], precision=hp)
                 + params["conv_b1"][i])
        h = jnp.dot(h, params["conv_w2"][i], precision=hp) + params["conv_b2"][i]
        if i < num_convs - 1:
            h = relu(h)
        x = h + x
    return x


# ----------------------------------------------------------------------------
# Main
# ----------------------------------------------------------------------------
if __name__ == "__main__":
    H = 128          # hidden_dim (lane-dense)
    N = 30           # num_nodes  (pads to 32)
    E = 300          # num_edges  (pads to 384 -> 3 edge blocks of 128)
    NUM_CONVS = 3

    key = jax.random.PRNGKey(0)
    keys = jax.random.split(key, 12)

    params = {
        "node_emb": 0.1 * jax.random.normal(keys[0], (100, H), jnp.float32),
        "edge_w1": 0.05 * jax.random.normal(keys[1], (2 * H, H), jnp.float32),
        "edge_b1": 0.05 * jax.random.normal(keys[2], (H,), jnp.float32),
        "edge_w2": 0.05 * jax.random.normal(keys[3], (H, H), jnp.float32),
        "edge_b2": 0.05 * jax.random.normal(keys[4], (H,), jnp.float32),
        "conv_w1": 0.05 * jax.random.normal(keys[5], (NUM_CONVS, H, H), jnp.float32),
        "conv_b1": 0.05 * jax.random.normal(keys[6], (NUM_CONVS, H), jnp.float32),
        "conv_w2": 0.05 * jax.random.normal(keys[7], (NUM_CONVS, H, H), jnp.float32),
        "conv_b2": 0.05 * jax.random.normal(keys[8], (NUM_CONVS, H), jnp.float32),
    }

    z = jax.random.randint(keys[9], (N,), 0, 100, jnp.int32)
    edge_index = jax.random.randint(keys[10], (2, E), 0, N, jnp.int32)
    edge_attr_in = 0.1 * jax.random.normal(keys[11], (E, 2 * H), jnp.float32)

    out = conditional_gin_encoder_forward(params, z, edge_index, edge_attr_in,
                                          num_convs=NUM_CONVS)
    out = jax.block_until_ready(out)

    ref = reference_forward(params, z, edge_index, edge_attr_in,
                            num_convs=NUM_CONVS)
    assert out.shape == (N, H)
    assert jnp.allclose(out, ref, rtol=2e-3, atol=2e-3), "mismatch vs reference"

    print("KERNEL_OK")
</pallas_src>

<mosaic_0001>
module attributes {stable_mosaic.version = 11 : i64} {
  func.func @_fused_gin_kernel(%arg0: i32, %arg1: i32, %arg2: memref<32x128xf32, #tpu.memory_space<vmem>>, %arg3: memref<128x256xf32, #tpu.memory_space<vmem>>, %arg4: memref<1x128xi32, #tpu.memory_space<vmem>>, %arg5: memref<1x128xi32, #tpu.memory_space<vmem>>, %arg6: memref<256x128xf32, #tpu.memory_space<vmem>>, %arg7: memref<1x128xf32, #tpu.memory_space<vmem>>, %arg8: memref<128x128xf32, #tpu.memory_space<vmem>>, %arg9: memref<1x128xf32, #tpu.memory_space<vmem>>, %arg10: memref<1x128x128xf32, #tpu.memory_space<vmem>>, %arg11: memref<1x1x128xf32, #tpu.memory_space<vmem>>, %arg12: memref<1x128x128xf32, #tpu.memory_space<vmem>>, %arg13: memref<1x1x128xf32, #tpu.memory_space<vmem>>, %arg14: memref<32x128xf32, #tpu.memory_space<vmem>>, %arg15: memref<32x128xf32, #tpu.memory_space<vmem>>) attributes {dimension_semantics = [#tpu.dimension_semantics<arbitrary>, #tpu.dimension_semantics<arbitrary>], iteration_bounds = array<i64: 3, 3>, scalar_prefetch = 0 : i64, scratch_operands = 1 : i64, tpu.core_type = #tpu.core_type<tc>, window_params = [{pipeline_mode = #tpu.pipeline_mode<synchronous>, transform_indices = @transform_0, window_bounds = array<i64: 32, 128>}, {transform_indices = @transform_1, window_bounds = array<i64: 128, 256>}, {transform_indices = @transform_2, window_bounds = array<i64: 1, 128>}, {transform_indices = @transform_3, window_bounds = array<i64: 1, 128>}, {pipeline_mode = #tpu.pipeline_mode<synchronous>, transform_indices = @transform_4, window_bounds = array<i64: 256, 128>}, {pipeline_mode = #tpu.pipeline_mode<synchronous>, transform_indices = @transform_5, window_bounds = array<i64: 1, 128>}, {pipeline_mode = #tpu.pipeline_mode<synchronous>, transform_indices = @transform_6, window_bounds = array<i64: 128, 128>}, {pipeline_mode = #tpu.pipeline_mode<synchronous>, transform_indices = @transform_7, window_bounds = array<i64: 1, 128>}, {transform_indices = @transform_8, window_bounds = array<i64: 1, 128, 128>}, {transform_indices = @transform_9, window_bounds = array<i64: 1, 1, 128>}, {transform_indices = @transform_10, window_bounds = array<i64: 1, 128, 128>}, {transform_indices = @transform_11, window_bounds = array<i64: 1, 1, 128>}, {pipeline_mode = #tpu.pipeline_mode<synchronous>, transform_indices = @transform_12, window_bounds = array<i64: 32, 128>}]} {
    %c0_i32 = arith.constant 0 : i32
    %0 = arith.cmpi eq, %arg0, %c0_i32 : i32
    %c0_i32_0 = arith.constant 0 : i32
    %1 = arith.cmpi eq, %arg1, %c0_i32_0 : i32
    %2 = arith.andi %0, %1 : i1
    %3 = arith.extui %2 : i1 to i32
    %c0_i32_1 = arith.constant 0 : i32
    %4 = arith.cmpi ne, %3, %c0_i32_1 : i32
    scf.if %4 {
      %c0_29 = arith.constant 0 : index
      %c0_30 = arith.constant 0 : index
      %44 = vector.load %arg2[%c0_29, %c0_30] : memref<32x128xf32, #tpu.memory_space<vmem>>, vector<32x128xf32>
      %c0_31 = arith.constant 0 : index
      %c0_32 = arith.constant 0 : index
      %45 = vector.load %arg14[%c0_31, %c0_32] : memref<32x128xf32, #tpu.memory_space<vmem>>, vector<32x128xf32>
      tpu.vector_store %arg14[%c0_31, %c0_32], %44 {strides = array<i32>} : memref<32x128xf32, #tpu.memory_space<vmem>>, vector<32x128xf32>,
    } else {
    }
    %c0_i32_2 = arith.constant 0 : i32
    %5 = arith.cmpi eq, %arg1, %c0_i32_2 : i32
    %6 = arith.extui %5 : i1 to i32
    %c0_i32_3 = arith.constant 0 : i32
    %7 = arith.cmpi ne, %6, %c0_i32_3 : i32
    scf.if %7 {
      %cst_29 = arith.constant 0.000000e+00 : f32
      %44 = vector.broadcast %cst_29 : f32 to vector<32x128xf32>
      %c0_30 = arith.constant 0 : index
      %c0_31 = arith.constant 0 : index
      %45 = vector.load %arg15[%c0_30, %c0_31] : memref<32x128xf32, #tpu.memory_space<vmem>>, vector<32x128xf32>
      tpu.vector_store %arg15[%c0_30, %c0_31], %44 {strides = array<i32>} : memref<32x128xf32, #tpu.memory_space<vmem>>, vector<32x128xf32>,
    } else {
    }
    %c0 = arith.constant 0 : index
    %c0_4 = arith.constant 0 : index
    %8 = vector.load %arg3[%c0, %c0_4] : memref<128x256xf32, #tpu.memory_space<vmem>>, vector<128x256xf32>
    %c0_5 = arith.constant 0 : index
    %c0_6 = arith.constant 0 : index
    %9 = vector.load %arg6[%c0_5, %c0_6] : memref<256x128xf32, #tpu.memory_space<vmem>>, vector<256x128xf32>
    %cst = arith.constant dense<0.000000e+00> : vector<128x128xf32>
    %10 = tpu.matmul %8, %9, %cst {dimension_numbers = #tpu.dot_dimension_numbers<[1], [0], [0], [1], [0, 0, 1, 1], [], []>} : vector<128x256xf32>, vector<256x128xf32>, vector<128x128xf32> -> vector<128x128xf32>
    %c0_7 = arith.constant 0 : index
    %c0_8 = arith.constant 0 : index
    %11 = vector.load %arg7[%c0_7, %c0_8] : memref<1x128xf32, #tpu.memory_space<vmem>>, vector<1x128xf32>
    %12 = vector.broadcast %11 : vector<1x128xf32> to vector<128x128xf32>
    %13 = arith.addf %10, %12 : vector<128x128xf32>
    %cst_9 = arith.constant 0.000000e+00 : f32
    %14 = vector.broadcast %cst_9 : f32 to vector<128x128xf32>
    %15 = arith.maximumf %13, %14 : vector<128x128xf32>
    %c0_10 = arith.constant 0 : index
    %c0_11 = arith.constant 0 : index
    %16 = vector.load %arg8[%c0_10, %c0_11] : memref<128x128xf32, #tpu.memory_space<vmem>>, vector<128x128xf32>
    %cst_12 = arith.constant dense<0.000000e+00> : vector<128x128xf32>
    %17 = tpu.matmul %15, %16, %cst_12 {dimension_numbers = #tpu.dot_dimension_numbers<[1], [0], [0], [1], [0, 0, 1, 1], [], []>} : vector<128x128xf32>, vector<128x128xf32>, vector<128x128xf32> -> vector<128x128xf32>
    %c0_13 = arith.constant 0 : index
    %c0_14 = arith.constant 0 : index
    %18 = vector.load %arg9[%c0_13, %c0_14] : memref<1x128xf32, #tpu.memory_space<vmem>>, vector<1x128xf32>
    %19 = vector.broadcast %18 : vector<1x128xf32> to vector<128x128xf32>
    %20 = arith.addf %17, %19 : vector<128x128xf32>
    %c0_15 = arith.constant 0 : index
    %c0_16 = arith.constant 0 : index
    %21 = vector.load %arg14[%c0_15, %c0_16] : memref<32x128xf32, #tpu.memory_space<vmem>>, vector<32x128xf32>
    %22 = tpu.iota {dimensions = array<i32: 0>} : vector<32x128xi32>
    %c0_17 = arith.constant 0 : index
    %c0_18 = arith.constant 0 : index
    %23 = vector.load %arg4[%c0_17, %c0_18] : memref<1x128xi32, #tpu.memory_space<vmem>>, vector<1x128xi32>
    %24 = vector.broadcast %23 : vector<1x128xi32> to vector<32x128xi32>
    %25 = arith.cmpi eq, %22, %24 : vector<32x128xi32>
    %26 = arith.extui %25 : vector<32x128xi1> to vector<32x128xi32>
    %27 = arith.sitofp %26 : vector<32x128xi32> to vector<32x128xf32>
    %c0_19 = arith.constant 0 : index
    %c0_20 = arith.constant 0 : index
    %28 = vector.load %arg5[%c0_19, %c0_20] : memref<1x128xi32, #tpu.memory_space<vmem>>, vector<1x128xi32>
    %29 = vector.broadcast %28 : vector<1x128xi32> to vector<32x128xi32>
    %30 = arith.cmpi eq, %22, %29 : vector<32x128xi32>
    %31 = arith.extui %30 : vector<32x128xi1> to vector<32x128xi32>
    %32 = arith.sitofp %31 : vector<32x128xi32> to vector<32x128xf32>
    %cst_21 = arith.constant dense<0.000000e+00> : vector<128x128xf32>
    %33 = tpu.matmul %27, %21, %cst_21 {dimension_numbers = #tpu.dot_dimension_numbers<[0], [0], [1], [1], [0, 1, 1, 1], [], []>} : vector<32x128xf32>, vector<32x128xf32>, vector<128x128xf32> -> vector<128x128xf32>
    %34 = arith.addf %33, %20 : vector<128x128xf32>
    %cst_22 = arith.constant 0.000000e+00 : f32
    %35 = vector.broadcast %cst_22 : f32 to vector<128x128xf32>
    %36 = arith.maximumf %34, %35 : vector<128x128xf32>
    %c0_23 = arith.constant 0 : index
    %c0_24 = arith.constant 0 : index
    %37 = vector.load %arg15[%c0_23, %c0_24] : memref<32x128xf32, #tpu.memory_space<vmem>>, vector<32x128xf32>
    %cst_25 = arith.constant dense<0.000000e+00> : vector<32x128xf32>
    %38 = tpu.matmul %32, %36, %cst_25 {dimension_numbers = #tpu.dot_dimension_numbers<[1], [0], [0], [1], [0, 0, 1, 1], [], []>} : vector<32x128xf32>, vector<128x128xf32>, vector<32x128xf32> -> vector<32x128xf32>
    %39 = arith.addf %37, %38 : vector<32x128xf32>
    %c0_26 = arith.constant 0 : index
    %c0_27 = arith.constant 0 : index
    %40 = vector.load %arg15[%c0_26, %c0_27] : memref<32x128xf32, #tpu.memory_space<vmem>>, vector<32x128xf32>
    tpu.vector_store %arg15[%c0_26, %c0_27], %39 {strides = array<i32>} : memref<32x128xf32, #tpu.memory_space<vmem>>, vector<32x128xf32>,
    %c2_i32 = arith.constant 2 : i32
    %41 = arith.cmpi eq, %arg1, %c2_i32 : i32
    %42 = arith.extui %41 : i1 to i32
    %c0_i32_28 = arith.constant 0 : i32
    %43 = arith.cmpi ne, %42, %c0_i32_28 : i32
    scf.if %43 {
      %c0_29 = arith.constant 0 : index
      %c0_30 = arith.constant 0 : index
      %44 = vector.load %arg15[%c0_29, %c0_30] : memref<32x128xf32, #tpu.memory_space<vmem>>, vector<32x128xf32>
      %45 = arith.addf %44, %21 : vector<32x128xf32>
      %c0_31 = arith.constant 0 : index
      %c0_32 = arith.constant 0 : index
      %c0_33 = arith.constant 0 : index
      %46 = vector.load %arg10[%c0_31, %c0_32, %c0_33] : memref<1x128x128xf32, #tpu.memory_space<vmem>>, vector<1x128x128xf32>
      %47 = vector.shape_cast %46 : vector<1x128x128xf32> to vector<128x128xf32>
      %c0_34 = arith.constant 0 : index
      %c0_35 = arith.constant 0 : index
      %c0_36 = arith.constant 0 : index
      %48 = vector.load %arg11[%c0_34, %c0_35, %c0_36] : memref<1x1x128xf32, #tpu.memory_space<vmem>>, vector<1x1x128xf32>
      %49 = vector.shape_cast %48 : vector<1x1x128xf32> to vector<1x128xf32>
      %c0_37 = arith.constant 0 : index
      %c0_38 = arith.constant 0 : index
      %c0_39 = arith.constant 0 : index
      %50 = vector.load %arg12[%c0_37, %c0_38, %c0_39] : memref<1x128x128xf32, #tpu.memory_space<vmem>>, vector<1x128x128xf32>
      %51 = vector.shape_cast %50 : vector<1x128x128xf32> to vector<128x128xf32>
      %c0_40 = arith.constant 0 : index
      %c0_41 = arith.constant 0 : index
      %c0_42 = arith.constant 0 : index
      %52 = vector.load %arg13[%c0_40, %c0_41, %c0_42] : memref<1x1x128xf32, #tpu.memory_space<vmem>>, vector<1x1x128xf32>
      %53 = vector.shape_cast %52 : vector<1x1x128xf32> to vector<1x128xf32>
      %cst_43 = arith.constant dense<0.000000e+00> : vector<32x128xf32>
      %54 = tpu.matmul %45, %47, %cst_43 {dimension_numbers = #tpu.dot_dimension_numbers<[1], [0], [0], [1], [0, 0, 1, 1], [], []>} : vector<32x128xf32>, vector<128x128xf32>, vector<32x128xf32> -> vector<32x128xf32>
      %55 = vector.broadcast %49 : vector<1x128xf32> to vector<32x128xf32>
      %56 = arith.addf %54, %55 : vector<32x128xf32>
      %cst_44 = arith.constant 0.000000e+00 : f32
      %57 = vector.broadcast %cst_44 : f32 to vector<32x128xf32>
      %58 = arith.maximumf %56, %57 : vector<32x128xf32>
      %cst_45 = arith.constant dense<0.000000e+00> : vector<32x128xf32>
      %59 = tpu.matmul %58, %51, %cst_45 {dimension_numbers = #tpu.dot_dimension_numbers<[1], [0], [0], [1], [0, 0, 1, 1], [], []>} : vector<32x128xf32>, vector<128x128xf32>, vector<32x128xf32> -> vector<32x128xf32>
      %60 = vector.broadcast %53 : vector<1x128xf32> to vector<32x128xf32>
      %61 = arith.addf %59, %60 : vector<32x128xf32>
      %c2_i32_46 = arith.constant 2 : i32
      %62 = arith.cmpi slt, %arg0, %c2_i32_46 : i32
      %cst_47 = arith.constant 0.000000e+00 : f32
      %63 = vector.broadcast %cst_47 : f32 to vector<32x128xf32>
      %64 = arith.maximumf %61, %63 : vector<32x128xf32>
      %65 = arith.select %62, %64, %61 : vector<32x128xf32>
      %66 = arith.addf %65, %21 : vector<32x128xf32>
      %c0_48 = arith.constant 0 : index
      %c0_49 = arith.constant 0 : index
      %67 = vector.load %arg14[%c0_48, %c0_49] : memref<32x128xf32, #tpu.memory_space<vmem>>, vector<32x128xf32>
      tpu.vector_store %arg14[%c0_48, %c0_49], %66 {strides = array<i32>} : memref<32x128xf32, #tpu.memory_space<vmem>>, vector<32x128xf32>,
    } else {
    }
    return
  }
  func.func @transform_0(%arg0: i32, %arg1: i32) -> (i32, i32) {
    %c0_i32 = arith.constant 0 : i32
    %c0_i32_0 = arith.constant 0 : i32
    %c0_i32_1 = arith.constant 0 : i32
    return %c0_i32, %c0_i32_0 : i32, i32
  }
  func.func @transform_1(%arg0: i32, %arg1: i32) -> (i32, i32) {
    %c0_i32 = arith.constant 0 : i32
    %c0_i32_0 = arith.constant 0 : i32
    return %arg1, %c0_i32 : i32, i32
  }
  func.func @transform_2(%arg0: i32, %arg1: i32) -> (i32, i32) {
    %c0_i32 = arith.constant 0 : i32
    %c0_i32_0 = arith.constant 0 : i32
    return %c0_i32, %arg1 : i32, i32
  }
  func.func @transform_3(%arg0: i32, %arg1: i32) -> (i32, i32) {
    %c0_i32 = arith.constant 0 : i32
    %c0_i32_0 = arith.constant 0 : i32
    return %c0_i32, %arg1 : i32, i32
  }
  func.func @transform_4(%arg0: i32, %arg1: i32) -> (i32, i32) {
    %c0_i32 = arith.constant 0 : i32
    %c0_i32_0 = arith.constant 0 : i32
    %c0_i32_1 = arith.constant 0 : i32
    return %c0_i32, %c0_i32_0 : i32, i32
  }
  func.func @transform_5(%arg0: i32, %arg1: i32) -> (i32, i32) {
    %c0_i32 = arith.constant 0 : i32
    %c0_i32_0 = arith.constant 0 : i32
    %c0_i32_1 = arith.constant 0 : i32
    return %c0_i32, %c0_i32_0 : i32, i32
  }
  func.func @transform_6(%arg0: i32, %arg1: i32) -> (i32, i32) {
    %c0_i32 = arith.constant 0 : i32
    %c0_i32_0 = arith.constant 0 : i32
    %c0_i32_1 = arith.constant 0 : i32
    return %c0_i32, %c0_i32_0 : i32, i32
  }
  func.func @transform_7(%arg0: i32, %arg1: i32) -> (i32, i32) {
    %c0_i32 = arith.constant 0 : i32
    %c0_i32_0 = arith.constant 0 : i32
    %c0_i32_1 = arith.constant 0 : i32
    return %c0_i32, %c0_i32_0 : i32, i32
  }
  func.func @transform_8(%arg0: i32, %arg1: i32) -> (i32, i32, i32) {
    %c0_i32 = arith.constant 0 : i32
    %c0_i32_0 = arith.constant 0 : i32
    %c0_i32_1 = arith.constant 0 : i32
    return %arg0, %c0_i32, %c0_i32_0 : i32, i32, i32
  }
  func.func @transform_9(%arg0: i32, %arg1: i32) -> (i32, i32, i32) {
    %c0_i32 = arith.constant 0 : i32
    %c0_i32_0 = arith.constant 0 : i32
    %c0_i32_1 = arith.constant 0 : i32
    return %arg0, %c0_i32, %c0_i32_0 : i32, i32, i32
  }
  func.func @transform_10(%arg0: i32, %arg1: i32) -> (i32, i32, i32) {
    %c0_i32 = arith.constant 0 : i32
    %c0_i32_0 = arith.constant 0 : i32
    %c0_i32_1 = arith.constant 0 : i32
    return %arg0, %c0_i32, %c0_i32_0 : i32, i32, i32
  }
  func.func @transform_11(%arg0: i32, %arg1: i32) -> (i32, i32, i32) {
    %c0_i32 = arith.constant 0 : i32
    %c0_i32_0 = arith.constant 0 : i32
    %c0_i32_1 = arith.constant 0 : i32
    return %arg0, %c0_i32, %c0_i32_0 : i32, i32, i32
  }
  func.func @transform_12(%arg0: i32, %arg1: i32) -> (i32, i32) {
    %c0_i32 = arith.constant 0 : i32
    %c0_i32_0 = arith.constant 0 : i32
    %c0_i32_1 = arith.constant 0 : i32
    return %c0_i32, %c0_i32_0 : i32, i32
  }
}

</mosaic_0001>

<bundles_post_ra>
// kernel: tpu_custom_call.1
= control target key start
LH: loop header
LB: loop body
LE: loop exit
PB: predicated region body
PF: predicated region fallthrough
CT: control target
= control target key end

     0   :  { %s3610_s0 = inlined_call_operand.hbm [shape: f32[32,128], index: 0, kind: input, shape index: {}]   ;;  %s3611_s1 = inlined_call_operand.hbm [shape: f32[384,256], index: 1, kind: input, shape index: {}]   ;;  %s3612_s2 = inlined_call_operand.vmem [shape: s32[1,384], index: 2, kind: input, shape index: {}]   ;;  %s3613_s3 = inlined_call_operand.hbm [shape: s32[1,384], index: 3, kind: input, shape index: {}]   ;;  %s3614_s4 = inlined_call_operand.hbm [shape: f32[256,128], index: 4, kind: input, shape index: {}]   ;;  %s3615_s5 = inlined_call_operand.hbm [shape: f32[1,128], index: 5, kind: input, shape index: {}]   ;;  %s3616_s6 = inlined_call_operand.hbm [shape: f32[128,128], index: 6, kind: input, shape index: {}]   ;;  %s3617_s7 = inlined_call_operand.vmem [shape: f32[1,128], index: 7, kind: input, shape index: {}]   ;;  %s3618_s8 = inlined_call_operand.hbm [shape: f32[3,128,128], index: 8, kind: input, shape index: {}]   ;;  %s3619_s9 = inlined_call_operand.vmem [shape: f32[3,1,128], index: 9, kind: input, shape index: {}]   ;;  %s3620_s10 = inlined_call_operand.hbm [shape: f32[3,128,128], index: 10, kind: input, shape index: {}]   ;;  %s3621_s11 = inlined_call_operand.vmem [shape: f32[3,1,128], index: 11, kind: input, shape index: {}]   ;;  %s3622_s12 = inlined_call_operand.hbm [shape: f32[32,128], index: 12, kind: output, shape index: {}]  }
   0x1   :  { %3645 = sst [smem:[#allocation31_spill]] %s3610_s0 }
   0x2   :  { %3646 = sst [smem:[#allocation32_spill]] %s3611_s1 }
   0x3   :  { %3647 = sst [smem:[#allocation33_spill]] %s3612_s2 }
   0x4   :  { %3648 = sst [smem:[#allocation34_spill]] %s3613_s3 }
   0x5   :  { %3649 = sst [smem:[#allocation35_spill]] %s3617_s7 }
   0x6   :  { %3650 = sst [smem:[#allocation36_spill]] %s3619_s9 }
   0x7   :  { %3651 = sst [smem:[#allocation37_spill]] %s3620_s10 }
   0x8   :  { %3652 = sst [smem:[#allocation38_spill]] %s3621_s11 }
   0x9   :  { %3653 = sst [smem:[#allocation39_spill]] %s3622_s12 }
   0xa   :  { %17 = vsyncpa [#allocation4], 0 }
   0xb   :  { %18 = vsyncpa [#allocation7], 0 }
   0xc   :  { %20 = vsyncpa [#allocation7 + $0x1], 0 }
   0xd   :  { %21 = vsyncpa [#allocation10], 0 }
   0xe   :  { %22 = vsyncpa [#allocation13], 0 }
   0xf   :  { %23 = vsyncpa [#allocation5], 0  ;;  %s2991_s21 = smov 0   ;;  %s2993_s22 = smov 0  }
  0x10   :  { %s2995_s23 = smov 0   ;;  %s2997_s24 = smov 0  }
  0x11   :  { %s2999_s25 = smov 0   ;;  %s3001_s26 = smov 0  }
  0x12   :  { %s3003_s27 = smov 0   ;;  %s3005_s28 = smov 0  }
  0x13   :  { %s3007_s29 = smov 0   ;;  %s3009_s30 = smov 0  }
  0x14   :  { %s3011_s13 = smov 0  }
  0x15 LB: > { %3654 = sst [smem:[#allocation24_spill]] %s2882_s25  ;;  %s38_s14 = sadd.s32 1, %s2898_s29  ;;  %s2906_s13 = sphi %s3011_s13, %s29_s13   ;;  %s2902_s30 = sphi %s3009_s30, %s3718_s30   ;;  %s2898_s29 = sphi %s3007_s29, %s3717_s29   ;;  %s2894_s28 = sphi %s3005_s28, %s3716_s28   ;;  %s2890_s27 = sphi %s3003_s27, %s3715_s27   ;;  %s2886_s26 = sphi %s3001_s26, %s3714_s26   ;;  %s2882_s25 = sphi %s2999_s25, %s3713_s25   ;;  %s2878_s24 = sphi %s2997_s24, %s3707_s24   ;;  %s2874_s23 = sphi %s2995_s23, %s3712_s23   ;;  %s2870_s22 = sphi %s2993_s22, %s3711_s22   ;;  %s2866_s21 = sphi %s2991_s21, %s3710_s21  }
  0x16   : > { %3655 = sst [smem:[#allocation25_spill]] %s2890_s27  ;;  %s69_s15 = sadd.s32 1, %s2886_s26 }
  0x17   : > { %3656 = sst [smem:[#allocation26_spill]] %s2894_s28  ;;  %p3048_p0 = scmp.ge.s32.totalorder %s38_s14, 3 }
  0x18   : > { %p76_p1 = scmp.ne.s32.totalorder %s2886_s26, %s2882_s25  ;;  %p3626_p2 = scmp.eq.s32.totalorder %s2906_s13, 0 }
  0x19   : > { %s3657_s16 = scalar_select %p3048_p0, 1, 0 }
  0x1a   : > { %p82_p3 = scmp.ne.s32.totalorder %s2882_s25, %s2878_s24  ;;  %s3720_s14 = smov (%p3048_p0, %s38_s14), 0 }
  0x1b   : > { %3658 = sst [smem:[#allocation27_spill]] %s3720_s14  ;;  %p78_p4 = por %p3626_p2, %p76_p1 }
  0x1c   : > { %s66_s17 = ssub.s32 %s2898_s29, %s3720_s14  ;;  %p3625_p5 = scmp.lt.s32.totalorder %s2906_s13, 9 }
  0x1d   : > { %p67_p6 = scmp.eq.s32.totalorder %s66_s17, 0  ;;  %s3629_s18 = sand.u32 1, %s2906_s13  }
  0x1e   : > { %s3630_s19 = sand.u32 1, %s2886_s26   ;;  %s1956_s7 = sshll.u32 %s2898_s29, 12 }
  0x1f   : > { %s3069_s20 = scalar_select %p67_p6, %s2886_s26, %s69_s15  }
  0x20   : > { %s1896_s12 = sshll.u32 %s3630_s19, 8  ;;  %s3660_s1 = sld [smem:[#allocation32_spill]] }
  0x21   : > { %3659 = sst [smem:[#allocation28_spill]] %s3069_s20  ;;  %s424_s28 = scalar_lea.vmem [#allocation6], %s1896_s12 }
  0x22   : > { %s432_s27 = sshll.u32 %s424_s28, 4  ;;  %p3079_p7 = pnand %p3625_p5, %p78_p4  ;;  %s433_s27 = int_to_ptr.vmem [resolvable:$true] %s432_s27 }
  0x23   : > { %s3085_s15 = scalar_lea.sflag [#allocation7], %s3629_s18  ;;  %s2565_s17 = scalar_lea.vmem %s433_s27, 4096 }
  0x24   : > { %p3627_p8 = pneg %p3079_p7  ;;  %p2566_p9 = scmp.ne.s32.totalorder %s433_s27, %s2565_s17 }
  0x26   : > { %s431_s2 = scalar_lea.hbm %s3660_s1, %s1956_s7  ;;  %p2568_p10 = pnand %p2566_p9, %p3627_p8 }
  0x27   : > { %s2908_s7 = smov [#allocation6]  }
  0x28   : > { %p2569_p11 = pneg %p2568_p10  ;;  %s2570_s9 = sshll.u32 %s2908_s7, 4  ;;  %s2571_s9 = int_to_ptr.vmem [resolvable:$false] %s2570_s9 }
  0x29   : > { %s2572_s11 = scalar_lea.vmem %s2571_s9, 8192  ;;  %p2573_p12 = scmp.lt.s32.totalorder %s433_s27, %s2571_s9 }
  0x2a   : > { %p2574_p13 = scmp.lt.s32.totalorder %s2572_s11, %s2565_s17 }
  0x2c   : > { %p2575_p1 = por %p2574_p13, %p2573_p12 }
  0x2e   : > { %p2576_p4 = pnand %p2575_p1, %p2569_p11 }
  0x30   : > { %2579 = shalt.err (!%p2576_p4)
}
  0x31   : > { %s2909_s12 = smov 256   ;;  %s2910_s28 = smov 16  }
  0x32   : > { %2429 = dma.hbm_to_vmem [thread:$0]  (!%p3079_p7), %s431_s2, 4096, %s433_s27, %s3085_s15, %s2909_s12, %s2909_s12, %s2910_s28  }
  0x33   : > { %s3096_s7 = sadd.s32 4294967295, %s2906_s13   ;;  %p244_p9 = scmp.ne.s32.totalorder %s2870_s22, %s2866_s21 }
  0x34   : > { %p3637_p6 = scmp.eq.s32.totalorder %s3096_s7, 0  ;;  %p1890_p10 = scmp.ge.s32.totalorder %s2906_s13, 1 }
  0x35   : > { %p354_p11 = scmp.lt.s32.totalorder %s2906_s13, 10  ;;  %s2911_s21 = smov [#allocation3]  }
  0x36   : > { %p3108_p12 = por %p3637_p6, %p82_p3  ;;  %p3114_p13 = por %p244_p9, %p3637_p6 }
  0x37   : > { %p3118_p1 = pnand %p1890_p10, %p354_p11  ;;  %s366_s27 = sshll.u32 %s2911_s21, 4  ;;  %s367_s27 = int_to_ptr.vmem [resolvable:$true] %s366_s27 }
  0x38   : > { %s3662_s17 = scalar_select %p3108_p12, 1, 0 }
  0x39   : > { %s3664_s9 = scalar_select %p3114_p13, 1, 0 }
  0x3a   : > { %3663 = sst [smem:[#allocation29_spill]] %s3662_s17  ;;  %p2413_p4 = pneg %p3118_p1 }
  0x3b   : > { %3665 = sst [smem:[#allocation30_spill]] %s3664_s9  ;;  %s2912_s11 = smov [#allocation9]  }
  0x3c   : > { %s3666_s2 = scalar_select %p3118_p1, 1, 0 }
  0x3d   : > { %p3126_p3 = pnand %p2413_p4, %p3637_p6  ;;  %s379_s12 = sshll.u32 %s2912_s11, 4  ;;  %s380_s12 = int_to_ptr.vmem [resolvable:$true] %s379_s12 }
  0x3e   : > { %s2591_s28 = scalar_lea.vmem %s367_s27, 512  ;;  %p2599_p2 = scmp.lt.s32.totalorder %s367_s27, %s367_s27 }
  0x3f   : > { %p2582_p9 = pneg %p3126_p3  ;;  %p2592_p10 = scmp.ne.s32.totalorder %s367_s27, %s2591_s28 }
  0x40   : > { %p2600_p8 = scmp.lt.s32.totalorder %s2591_s28, %s2591_s28 }
  0x41   : > { %p2594_p11 = pnand %p2592_p10, %p2582_p9 }
  0x42   : > { %p2601_p13 = por %p2600_p8, %p2599_p2 }
  0x43   : > { %p2595_p5 = pneg %p2594_p11 }
  0x45   : > { %p2602_p4 = pnand %p2601_p13, %p2595_p5 }
  0x47   : > { %2605 = shalt.err (!%p2602_p4)
}
  0x48   : > { %s3641_s21 = smov 128   ;;  %s3643_s18 = smov 8  }
  0x49   : > { %s3668_s0 = sld [smem:[#allocation31_spill]]  ;;  %s2617_s1 = scalar_lea.vmem %s380_s12, 4096 }
  0x4a   : > { %p2618_p10 = scmp.ne.s32.totalorder %s380_s12, %s2617_s1  ;;  %p2625_p5 = scmp.lt.s32.totalorder %s380_s12, %s380_s12 }
  0x4b   : > { %p2626_p8 = scmp.lt.s32.totalorder %s2617_s1, %s2617_s1 }
  0x4c   : > { %p2620_p11 = pnand %p2618_p10, %p2582_p9 }
  0x4d   : > { %p2627_p13 = por %p2626_p8, %p2625_p5 }
  0x4e   : > { %p2621_p2 = pneg %p2620_p11 }
  0x4f   : > { %2416 = dma.hbm_to_vmem [thread:$0]  (!%p3126_p3), %s3668_s0, 512, %s367_s27, [#allocation4], %s3641_s21, %s3641_s21, %s3643_s18  }
  0x50   : > { %p2628_p4 = pnand %p2627_p13, %p2621_p2 }
  0x52   : > { %2631 = shalt.err (!%p2628_p4)
}
  0x53   : > { %2419 = dma.hbm_to_vmem [thread:$0]  (!%p3126_p3), %s3614_s4, 4096, %s380_s12, [#allocation10], %s3641_s21, %s3641_s21, %s3643_s18  }
  0x54   : > { %s1900_s19 = sshll.u32 %s2898_s29, 4  ;;  %s3669_s27 = sand.u32 1, %s2886_s26  }
  0x55   : > { %s451_s11 = scalar_lea.vmem [#allocation8], %s3669_s27  ;;  %s3670_s3 = sld [smem:[#allocation34_spill]] }
  0x56   : > { %s458_s0 = sshll.u32 %s451_s11, 4  ;;  %p3671_p11 = pneg %p3079_p7  ;;  %s459_s0 = int_to_ptr.vmem [resolvable:$true] %s458_s0 }
  0x57   : > { %s2645_s17 = scalar_lea.vmem %s459_s0, 16  ;;  %s2915_s14 = smov [#allocation8]  }
  0x58   : > { %p2646_p10 = scmp.ne.s32.totalorder %s459_s0, %s2645_s17  ;;  %s2650_s28 = sshll.u32 %s2915_s14, 4  ;;  %s2651_s28 = int_to_ptr.vmem [resolvable:$false] %s2650_s28 }
  0x59   : > { %s2652_s25 = scalar_lea.vmem %s2651_s28, 32  ;;  %p2653_p8 = scmp.lt.s32.totalorder %s459_s0, %s2651_s28 }
  0x5a   : > { %p2648_p2 = pnand %p2646_p10, %p3671_p11  ;;  %p2654_p13 = scmp.lt.s32.totalorder %s2652_s25, %s2645_s17 }
  0x5b   : > { %s456_s9 = scalar_lea.hbm %s3670_s3, %s1900_s19 }
  0x5c   : > { %p2649_p5 = pneg %p2648_p2  ;;  %p2655_p4 = por %p2654_p13, %p2653_p8 }
  0x5e   : > { %p2656_p6 = pnand %p2655_p4, %p2649_p5 }
  0x60   : > { %2659 = shalt.err (!%p2656_p6)
}
  0x61   : > { %2432 = dma.hbm_to_vmem [thread:$0]  (!%p3079_p7), %s456_s9, 16, %s459_s0, %s3085_s15  }
  0x62   : > { %s2916_s20 = smov [#allocation11]   ;;  %s2917_s19 = smov [#allocation12]  }
  0x63   : > { %s393_s12 = sshll.u32 %s2916_s20, 4  ;;  %s403_s27 = sshll.u32 %s2917_s19, 4  ;;  %s394_s12 = int_to_ptr.vmem [resolvable:$true] %s393_s12  ;;  %s404_s27 = int_to_ptr.vmem [resolvable:$true] %s403_s27 }
  0x64   : > { %s2671_s11 = scalar_lea.vmem %s394_s12, 16  ;;  %s2678_s25 = scalar_lea.vmem %s394_s12, 32 }
  0x65   : > { %p2672_p10 = scmp.ne.s32.totalorder %s394_s12, %s2671_s11  ;;  %p2679_p5 = scmp.lt.s32.totalorder %s394_s12, %s394_s12 }
  0x66   : > { %p2680_p6 = scmp.lt.s32.totalorder %s2678_s25, %s2671_s11 }
  0x67   : > { %p2674_p11 = pnand %p2672_p10, %p2582_p9 }
  0x68   : > { %p2681_p8 = por %p2680_p6, %p2679_p5 }
  0x69   : > { %p2675_p2 = pneg %p2674_p11 }
  0x6b   : > { %p2682_p13 = pnand %p2681_p8, %p2675_p2 }
  0x6d   : > { %2685 = shalt.err (!%p2682_p13)
}
  0x6e   : > { %2422 = dma.hbm_to_vmem [thread:$0]  (!%p3126_p3), %s3615_s5, 16, %s394_s12, [#allocation10]  }
  0x6f   : > { %s2697_s17 = scalar_lea.vmem %s404_s27, 2048  ;;  %p2705_p11 = scmp.lt.s32.totalorder %s404_s27, %s404_s27 }
  0x70   : > { %p2698_p7 = scmp.ne.s32.totalorder %s404_s27, %s2697_s17  ;;  %p2706_p12 = scmp.lt.s32.totalorder %s2697_s17, %s2697_s17 }
  0x72   : > { %p2700_p4 = pnand %p2698_p7, %p2582_p9  ;;  %p2707_p1 = por %p2706_p12, %p2705_p11 }
  0x74   : > { %p2701_p10 = pneg %p2700_p4 }
  0x76   : > { %p2708_p0 = pnand %p2707_p1, %p2701_p10 }
  0x78   : > { %2711 = shalt.err (!%p2708_p0)
}
  0x79   : > { %2425 = dma.hbm_to_vmem [thread:$0]  (!%p3126_p3), %s3616_s6, 2048, %s404_s27, [#allocation13], %s3641_s21, %s3641_s21, %s3643_s18  }
  0x7a   : > { %s41_s14 = sadd.s32 1, %s2902_s30  ;;  %s231_s24 = sadd.s32 1, %s2874_s23 }
  0x7b   : > { %p3672_p0 = scmp.ne.s32.totalorder %s3657_s16, 0  ;;  %p238_p12 = scmp.ne.s32.totalorder %s2874_s23, %s2870_s22 }
  0x7c   : > { %s467_s28 = sand.u32 1, %s2874_s23   ;;  %p3673_p9 = scmp.eq.s32.totalorder %s2906_s13, 0 }
  0x7d   : > { %s3722_s14 = smov (!%p3672_p0, %s41_s14), %s2902_s30  ;;  %s3193_s20 = sshll.u32 %s467_s28, 7 }
  0x7e   : > { %p43_p1 = scmp.ge.s32.totalorder %s3722_s14, 3  ;;  %p240_p2 = por %p238_p12, %p3673_p9 }
  0x7f   : > { %s1957_s12 = sshll.u32 %s2902_s30, 11  ;;  %s469_s19 = scalar_lea.vmem [#allocation14], %s3193_s20 }
  0x80   : > { %s3724_s14 = smov (%p43_p1, %s3722_s14), 0  ;;  %s476_s27 = sshll.u32 %s469_s19, 4  ;;  %s477_s27 = int_to_ptr.vmem [resolvable:$true] %s476_s27 }
  0x81   : > { %s228_s11 = ssub.s32 %s2902_s30, %s3724_s14  ;;  %s475_s0 = scalar_lea.hbm %s3618_s8, %s1957_s12 }
  0x82   : > { %p229_p3 = scmp.eq.s32.totalorder %s228_s11, 0  ;;  %p3674_p5 = scmp.lt.s32.totalorder %s2906_s13, 9 }
  0x83   : > { %s3676_s28 = sld [smem:[#allocation37_spill]]  ;;  %s3677_s21 = sand.u32 1, %s2906_s13  }
  0x84   : > { %p3208_p6 = pnand %p3674_p5, %p240_p2  ;;  %s466_s18 = scalar_lea.sflag [#allocation4], %s3677_s21 }
  0x85   : > { %s3213_s17 = scalar_select %p229_p3, %s2874_s23, %s231_s24  }
  0x86   : > { %p2714_p8 = pneg %p3208_p6  ;;  %s2725_s11 = scalar_lea.vmem %s477_s27, 2048 }
  0x87   : > { %p2726_p13 = scmp.ne.s32.totalorder %s477_s27, %s2725_s11  ;;  %s2918_s25 = smov [#allocation14]  }
  0x88   : > { %s2730_s16 = sshll.u32 %s2918_s25, 4  ;;  %s2731_s16 = int_to_ptr.vmem [resolvable:$false] %s2730_s16 }
  0x89   : > { %s3218_s19 = scalar_lea.hbm %s3676_s28, %s1957_s12  ;;  %p2728_p7 = pnand %p2726_p13, %p2714_p8 }
  0x8a   : > { %s2732_s24 = scalar_lea.vmem %s2731_s16, 4096  ;;  %p2733_p10 = scmp.lt.s32.totalorder %s477_s27, %s2731_s16 }
  0x8b   : > { %p2729_p4 = pneg %p2728_p7  ;;  %p2734_p11 = scmp.lt.s32.totalorder %s2732_s24, %s2725_s11 }
  0x8d   : > { %p2735_p0 = por %p2734_p11, %p2733_p10 }
  0x8f   : > { %p2736_p12 = pnand %p2735_p0, %p2729_p4 }
  0x91   : > { %2739 = shalt.err (!%p2736_p12)
}
  0x92   : > { %s3678_s21 = smov 8   ;;  %s3679_s12 = smov 128  }
  0x93   : > { %2435 = dma.hbm_to_vmem [thread:$0]  (!%p3208_p6), %s475_s0, 2048, %s477_s27, %s466_s18, %s3679_s12, %s3679_s12, %s3678_s21  }
  0x94   : > { %s496_s9 = scalar_lea.vmem [#allocation15], %s3193_s20  ;;  %s2919_s11 = smov [#allocation15]  }
  0x95   : > { %s503_s1 = sshll.u32 %s496_s9, 4  ;;  %s2758_s25 = sshll.u32 %s2919_s11, 4  ;;  %s504_s1 = int_to_ptr.vmem [resolvable:$true] %s503_s1  ;;  %s2759_s25 = int_to_ptr.vmem [resolvable:$false] %s2758_s25 }
  0x96   : > { %s2753_s28 = scalar_lea.vmem %s504_s1, 2048  ;;  %s2760_s16 = scalar_lea.vmem %s2759_s25, 4096 }
  0x97   : > { %p2754_p1 = scmp.ne.s32.totalorder %s504_s1, %s2753_s28  ;;  %p2761_p3 = scmp.lt.s32.totalorder %s504_s1, %s2759_s25 }
  0x98   : > { %p2762_p5 = scmp.lt.s32.totalorder %s2760_s16, %s2753_s28 }
  0x99   : > { %p2756_p9 = pnand %p2754_p1, %p2714_p8 }
  0x9a   : > { %p2763_p13 = por %p2762_p5, %p2761_p3 }
  0x9b   : > { %p2757_p2 = pneg %p2756_p9 }
  0x9d   : > { %p2764_p7 = pnand %p2763_p13, %p2757_p2 }
  0x9f   : > { %2767 = shalt.err (!%p2764_p7)
}
  0xa0   : > { %2438 = dma.hbm_to_vmem [thread:$0]  (!%p3208_p6), %s3218_s19, 2048, %s504_s1, %s3085_s15, %s3679_s12, %s3679_s12, %s3678_s21  }
  0xa1   : > { %p3680_p8 = scmp.ne.s32.totalorder %s3666_s2, 0 }
  0xa2   : > { %p3681_p4 = scmp.eq.s32.totalorder (!%p3680_p8), %s3096_s7, 0 }
  0xa3   : > { %521 = sbr.rel (%p3680_p8) target bundleno = 1447 (0x5a7), region = 68 }
  0xa8   : > { %2837 = dma.done.wait (%p3681_p4), [#allocation4], 512   ;;  %p3682_p10 = pmov %p3681_p4 }
  0xa9   : > { %s3683_s18 = sld [smem:[#allocation24_spill]]  ;;  %s527_s27 = sand.u32 1, %s3096_s7  }
  0xaa   : > { %2839 = vsyncadd (%p3682_p10), [#allocation4], 4294966784  ;;  %s3684_s20 = sld [smem:[#allocation29_spill]]  ;;  %s528_s24 = scalar_lea.sflag [#allocation7], %s527_s27 }
  0xaf   : > { %s529_s0 = sand.u32 1, %s3683_s18  }
  0xb0   : > { %s1909_s10 = sshll.u32 %s529_s0, 8  ;;  %p3685_p11 = scmp.ne.s32.totalorder %s3684_s20, 0 }
  0xb1   : > { %s3251_s9 = scalar_lea.vmem [#allocation6], %s1909_s10 }
  0xb2   : > { %2841 = dma.done.wait (%p3685_p11), %s528_s24, 4112  }
  0xb3   : > { %2843 = vsyncadd (%p3685_p11), %s528_s24, 4294963184  ;;  %s3257_s15 = scalar_lea.vmem [#allocation8], %s529_s0  ;;  %p3686_p6 = pmov %p3681_p4 }
  0xb4   : > { %p3687_p0 = pmov %p3681_p4 }
  0xb5   : > { %2845 = dma.done.wait (%p3686_p6), [#allocation10], 4112  }
  0xb6   : > { %2847 = vsyncadd (%p3687_p0), [#allocation10], 4294963184  ;;  %p3688_p12 = pmov %p3687_p0 }
  0xb7   : > { %p3689_p1 = pmov %p3687_p0 }
  0xb8   : > { %2849 = dma.done.wait (%p3688_p12), [#allocation13], 2048  }
  0xb9   : > { %2851 = vsyncadd (%p3689_p1), [#allocation13], 4294965248  ;;  %s3690_s2 = sld [smem:[#allocation30_spill]]  ;;  %s558_s19 = sand.u32 1, %s2870_s22  }
  0xba   : > { %s1913_s21 = sshll.u32 %s558_s19, 7  ;;  %s557_s12 = scalar_lea.sflag [#allocation4], %s527_s27 }
  0xbb   : > { %s3268_s1 = scalar_lea.vmem [#allocation14], %s1913_s21 }
  0xbf   : > { %p3691_p9 = scmp.ne.s32.totalorder %s3690_s2, 0 }
  0xc1   : > { %2853 = dma.done.wait (%p3691_p9), %s557_s12, 2048  }
  0xc2   : > { %2855 = vsyncadd (%p3691_p9), %s557_s12, 4294965248  ;;  %s3274_s28 = scalar_lea.vmem [#allocation15], %s1913_s21 }
  0xc3   : > { %2857 = dma.done.wait (%p3691_p9), %s528_s24, 2048  }
  0xc4   : > { %2859 = vsyncadd (%p3691_p9), %s528_s24, 4294965248  ;;  %s3692_s11 = sld [smem:[#allocation25_spill]] }
  0xc5   : > { %s3693_s25 = sld [smem:[#allocation26_spill]] }
  0xc6   : > { %s3694_s20 = sld [smem:[#allocation33_spill]] }
  0xc7   : > { %s3695_s24 = sld [smem:[#allocation36_spill]] }
  0xc8   : > { %s3696_s12 = sld [smem:[#allocation38_spill]] }
  0xca   : > { %p629_p2 = scmp.lt.s32.totalorder %s3692_s11, 2  ;;  %p639_p13 = scmp.eq.s32.totalorder %s3692_s11, 0 }
  0xcb   : > { %p632_p3 = scmp.lt.s32.totalorder %s3693_s25, 2  ;;  %p638_p5 = scmp.eq.s32.totalorder %s3693_s25, 0 }
  0xcc   : > { %s3726_s11 = smov (!%p629_p2, %s3692_s11), 2 }
  0xcd   : > { %s3728_s25 = smov (!%p632_p3, %s3693_s25), 2  ;;  %s631_s27 = scalar_lea.vmem %s3694_s20, %s3726_s11 }
  0xce   : > { %p640_p7 = pnand %p639_p13, %p638_p5  ;;  %s634_s2 = scalar_lea.vmem %s3695_s24, %s3728_s25 }
  0xcf   : > { %s637_s3 = scalar_lea.vmem %s3696_s12, %s3728_s25 }
  0xd0   : > { %643 = sbr.rel (%p640_p7) target bundleno = 216 (0xd8), region = 104 }
  0xd5   : > { %v644_v0 = vld [vmem:[#allocation3] sm:$0xff]  ;;  %v645_v1 = vld [vmem:[#allocation3 + $0x8] sm:$0xff]  ;;  %v646_v2 = vld [vmem:[#allocation3 + $0x10] sm:$0xff] }
  0xd6   : > { %648 = vst [vmem:[#allocation16] sm:$0xff] %v644_v0  ;;  %649 = vst [vmem:[#allocation16 + $0x8] sm:$0xff] %v645_v1  ;;  %v647_v3 = vld [vmem:[#allocation3 + $0x18] sm:$0xff] }
  0xd7   : > { %650 = vst [vmem:[#allocation16 + $0x10] sm:$0xff] %v646_v2  ;;  %651 = vst [vmem:[#allocation16 + $0x18] sm:$0xff] %v647_v3 }
  0xd8 PF: > { %s3697_s16 = sld [smem:[#allocation25_spill]] }
  0xde   : > { %p1915_p8 = scmp.ne.s32.totalorder %s3697_s16, 0 }
  0xe0   : > { %654 = sbr.rel (%p1915_p8) target bundleno = 232 (0xe8), region = 108 }
  0xe5   : > { %v2920_v4 = vmov 0.0  }
  0xe6   : > { %655 = vst [vmem:[#allocation2 + $0x10] sm:$0xff] %v2920_v4  ;;  %656 = vst [vmem:[#allocation2] sm:$0xff] %v2920_v4 }
  0xe7   : > { %657 = vst [vmem:[#allocation2 + $0x18] sm:$0xff] %v2920_v4  ;;  %658 = vst [vmem:[#allocation2 + $0x8] sm:$0xff] %v2920_v4 }
  0xe8 PF: > { %v722_v5 = vld [vmem:[#allocation9 + $0xf8] sm:$0xff]  ;;  %v721_v7 = vld [vmem:[#allocation9 + $0xf0] sm:$0xff]  ;;  %v720_v9 = vld [vmem:[#allocation9 + $0xe8] sm:$0xff]  ;;  %v1063_v21 = vlaneseq  ;;  %v2921_v38 = vmov 0.0   ;;  %vm1134_vm4 = vcmask 261120   ;;  %s3699_s11 = sld [smem:[#allocation35_spill]] }
  0xe9   : > { %v706_v6 = vld [vmem:[#allocation9 + $0x78] sm:$0xff]  ;;  %1959 = vmatprep.subr.mxu0 %v722_v5  ;;  %v705_v8 = vld [vmem:[#allocation9 + $0x70] sm:$0xff]  ;;  %v704_v10 = vld [vmem:[#allocation9 + $0x68] sm:$0xff] }
  0xea   : > { %1960 = vmatpush3.msra.mxu0 %v706_v6  ;;  %v719_v11 = vld [vmem:[#allocation9 + $0xe0] sm:$0xff]  ;;  %v718_v13 = vld [vmem:[#allocation9 + $0xd8] sm:$0xff]  ;;  %v717_v15 = vld [vmem:[#allocation9 + $0xd0] sm:$0xff]  ;;  %v3306_v26 = vshrl.u32 %v1063_v21, 7 }
  0xeb   : > { %1961 = vmatprep.subr.mxu0 %v721_v7  ;;  %v703_v12 = vld [vmem:[#allocation9 + $0x60] sm:$0xff]  ;;  %v702_v14 = vld [vmem:[#allocation9 + $0x58] sm:$0xff]  ;;  %v701_v16 = vld [vmem:[#allocation9 + $0x50] sm:$0xff] }
  0xec   : > { %1962 = vmatpush3.msra.mxu0 %v705_v8  ;;  %v716_v17 = vld [vmem:[#allocation9 + $0xc8] sm:$0xff]  ;;  %v715_v20 = vld [vmem:[#allocation9 + $0xc0] sm:$0xff]  ;;  %v714_v23 = vld [vmem:[#allocation9 + $0xb8] sm:$0xff]  ;;  %v3309_v29 = vadd.s32 8, %v3306_v26  ;;  %v3319_v35 = vadd.s32 16, %v3306_v26  ;;  %v3323_v45 = vadd.s32 24, %v3306_v26 }
  0xed   : > { %1963 = vmatprep.subr.mxu0 %v720_v9  ;;  %v660_v18 = vld [vmem:[%s3251_s9 + $0x8] sm:$0xff]  ;;  %v698_v24 = vld [vmem:[#allocation9 + $0x38] sm:$0xff]  ;;  %v713_v25 = vld [vmem:[#allocation9 + $0xb0] sm:$0xff] }
  0xee   : > { %1964 = vmatpush3.msra.mxu0 %v704_v10  ;;  %v700_v19 = vld [vmem:[#allocation9 + $0x48] sm:$0xff]  ;;  %794 = vmatprep.mubr.f32.mxu0 %v660_v18  ;;  %v699_v22 = vld [vmem:[#allocation9 + $0x40] sm:$0xff]  ;;  %v697_v27 = vld [vmem:[#allocation9 + $0x30] sm:$0xff] }
  0xef   : > { %1965 = vmatprep.subr.mxu0 %v719_v11  ;;  %v712_v28 = vld [vmem:[#allocation9 + $0xa8] sm:$0xff]  ;;  %v711_v31 = vld [vmem:[#allocation9 + $0xa0] sm:$0xff]  ;;  %v1918_v33 = vld [vmem:[%s631_s27] ss:$0 sm:$0xff]  ;;  %s3700_s27 = sld [smem:[#allocation25_spill]] }
  0xf0   : > { %1966 = vmatpush3.msra.mxu0 %v703_v12  ;;  %v696_v30 = vld [vmem:[#allocation9 + $0x28] sm:$0xff]  ;;  %v695_v32 = vld [vmem:[#allocation9 + $0x20] sm:$0xff]  ;;  %v710_v34 = vld [vmem:[#allocation9 + $0x98] sm:$0xff]  ;;  %vm1073_vm0 = vcmp.eq.s32.totalorder %v3306_v26, %v1918_v33  ;;  %vm1074_vm1 = vcmp.eq.s32.totalorder %v3309_v29, %v1918_v33  ;;  %vm1075_vm2 = vcmp.eq.s32.totalorder %v3319_v35, %v1918_v33  ;;  %vm1076_vm3 = vcmp.eq.s32.totalorder %v3323_v45, %v1918_v33 }
  0xf1   : > { %1967 = vmatprep.subr.mxu0 %v718_v13  ;;  %v906_v36 = vld [vmem:[#allocation12 + $0x78] sm:$0xff]  ;;  %v1919_v39 = vsel %vm1073_vm0, 1.0, %v2921_v38  ;;  %v905_v40 = vld [vmem:[#allocation12 + $0x70] sm:$0xff]  ;;  %v1920_v43 = vsel %vm1074_vm1, 1.0, %v2921_v38  ;;  %v708_v44 = vld [vmem:[#allocation9 + $0x88] sm:$0xff]  ;;  %v1921_v51 = vsel %vm1075_vm2, 1.0, %v2921_v38 }
  0xf2   : > { %1968 = vmatpush3.msra.mxu0 %v702_v14  ;;  %v694_v37 = vld [vmem:[#allocation9 + $0x18] sm:$0xff]  ;;  %2151 = vmatprep.subr.mxu1 %v906_v36  ;;  %v709_v41 = vld [vmem:[#allocation9 + $0x90] sm:$0xff]  ;;  %v692_v47 = vld [vmem:[#allocation9 + $0x8] sm:$0xff]  ;;  %v1922_v55 = vsel %vm1076_vm3, 1.0, %v2921_v38 }
  0xf3   : > { %1969 = vmatprep.subr.mxu0 %v717_v15  ;;  %1102 = vxpose.xlu0.b32.start [1/4] (short) %v1919_v39, 128  ;;  %v693_v42 = vld [vmem:[#allocation9 + $0x10] sm:$0xff]  ;;  %v707_v48 = vld [vmem:[#allocation9 + $0x80] sm:$0xff] }
  0xf4   : > { %1970 = vmatpush3.msra.mxu0 %v701_v16  ;;  %2152 = vmatpush3.msra.mxu1 %v906_v36  ;;  %v904_v46 = vld [vmem:[#allocation12 + $0x68] sm:$0xff]  ;;  %v903_v49 = vld [vmem:[#allocation12 + $0x60] sm:$0xff]  ;;  %v662_v53 = vld [vmem:[%s3251_s9 + $0x18] sm:$0xff] }
  0xf5   : > { %1971 = vmatprep.subr.mxu0 %v716_v17  ;;  %2153 = vmatprep.subr.mxu1 %v905_v40  ;;  %v691_v50 = vld [vmem:[#allocation9] sm:$0xff]  ;;  %v901_v56 = vld [vmem:[#allocation12 + $0x50] sm:$0xff]  ;;  %v900_v59 = vld [vmem:[#allocation12 + $0x48] sm:$0xff]  ;;  %p1948_p4 = scmp.ne.s32.totalorder %s3700_s27, 2 }
  0xf6   : > { %1972 = vmatpush3.msra.mxu0 %v700_v19  ;;  %2154 = vmatpush3.msra.mxu1 %v905_v40  ;;  %v659_v52 = vld [vmem:[%s3251_s9] sm:$0xff]  ;;  %v661_v57 = vld [vmem:[%s3251_s9 + $0x10] sm:$0xff]  ;;  %v664_v58 = vld [vmem:[%s3251_s9 + $0x28] sm:$0xff] }
  0xf7   : > { %1973 = vmatprep.subr.mxu0 %v715_v20  ;;  %1103 = vxpose.xlu0.b32.cont [2/4] (short) %v1920_v43, 128  ;;  %v902_v54 = vld [vmem:[#allocation12 + $0x58] sm:$0xff]  ;;  %v899_v60 = vld [vmem:[#allocation12 + $0x40] sm:$0xff]  ;;  %v897_v0 = vld [vmem:[#allocation12 + $0x30] sm:$0xff] }
  0xf8   : > { %1974 = vmatpush3.msra.mxu0 %v699_v22  ;;  %2155 = vmatprep.subr.mxu1 %v904_v46  ;;  %v663_v61 = vld [vmem:[%s3251_s9 + $0x20] sm:$0xff]  ;;  %v666_v62 = vld [vmem:[%s3251_s9 + $0x38] sm:$0xff]  ;;  %v665_v1 = vld [vmem:[%s3251_s9 + $0x30] sm:$0xff] }
  0xf9   : > { %1975 = vmatprep.subr.mxu0 %v714_v23  ;;  %2156 = vmatpush3.msra.mxu1 %v904_v46  ;;  %v898_v63 = vld [vmem:[#allocation12 + $0x38] sm:$0xff]  ;;  %v668_v2 = vld [vmem:[%s3251_s9 + $0x48] sm:$0xff]  ;;  %v669_v5 = vld [vmem:[%s3251_s9 + $0x50] sm:$0xff] }
  0xfa   : > { %1976 = vmatpush3.msra.mxu0 %v698_v24  ;;  %2157 = vmatprep.subr.mxu1 %v903_v49  ;;  %v667_v3 = vld [vmem:[%s3251_s9 + $0x40] sm:$0xff]  ;;  %v670_v4 = vld [vmem:[%s3251_s9 + $0x58] sm:$0xff]  ;;  %v672_v6 = vld [vmem:[%s3251_s9 + $0x68] sm:$0xff] }
  0xfb   : > { %1977 = vmatprep.subr.mxu0 %v713_v25  ;;  %1104 = vxpose.xlu0.b32.cont [3/4] (short) %v1921_v51, 128  ;;  %v671_v7 = vld [vmem:[%s3251_s9 + $0x60] sm:$0xff]  ;;  %v674_v8 = vld [vmem:[%s3251_s9 + $0x78] sm:$0xff]  ;;  %v673_v9 = vld [vmem:[%s3251_s9 + $0x70] sm:$0xff] }
  0xfc   : > { %1978 = vmatpush3.msra.mxu0 %v697_v27  ;;  %2158 = vmatpush3.msra.mxu1 %v903_v49  ;;  %v676_v10 = vld [vmem:[%s3251_s9 + $0x88] sm:$0xff]  ;;  %v675_v11 = vld [vmem:[%s3251_s9 + $0x80] sm:$0xff]  ;;  %v678_v12 = vld [vmem:[%s3251_s9 + $0x98] sm:$0xff] }
  0xfd   : > { %1979 = vmatprep.subr.mxu0 %v712_v28  ;;  %2159 = vmatprep.subr.mxu1 %v902_v54  ;;  %v677_v13 = vld [vmem:[%s3251_s9 + $0x90] sm:$0xff]  ;;  %v680_v14 = vld [vmem:[%s3251_s9 + $0xa8] sm:$0xff]  ;;  %v679_v15 = vld [vmem:[%s3251_s9 + $0xa0] sm:$0xff] }
  0xfe   : > { %1980 = vmatpush3.msra.mxu0 %v696_v30  ;;  %2160 = vmatpush3.msra.mxu1 %v902_v54  ;;  %v682_v16 = vld [vmem:[%s3251_s9 + $0xb8] sm:$0xff]  ;;  %v681_v17 = vld [vmem:[%s3251_s9 + $0xb0] sm:$0xff]  ;;  %v684_v18 = vld [vmem:[%s3251_s9 + $0xc8] sm:$0xff] }
  0xff   : > { %1981 = vmatprep.subr.mxu0 %v711_v31  ;;  %1105 = vxpose.xlu0.b32.end [4/4] (short) %v1922_v55, 128  ;;  %v683_v19 = vld [vmem:[%s3251_s9 + $0xc0] sm:$0xff]  ;;  %v686_v20 = vld [vmem:[%s3251_s9 + $0xd8] sm:$0xff]  ;;  %v685_v21 = vld [vmem:[%s3251_s9 + $0xd0] sm:$0xff] }
 0x100   : > { %1982 = vmatpush3.msra.mxu0 %v695_v32  ;;  %2161 = vmatprep.subr.mxu1 %v901_v56  ;;  %v688_v22 = vld [vmem:[%s3251_s9 + $0xe8] sm:$0xff]  ;;  %v687_v23 = vld [vmem:[%s3251_s9 + $0xe0] sm:$0xff]  ;;  %v690_v24 = vld [vmem:[%s3251_s9 + $0xf8] sm:$0xff] }
 0x101   : > { %1983 = vmatprep.subr.mxu0 %v710_v34  ;;  %2162 = vmatpush3.msra.mxu1 %v901_v56  ;;  %v689_v25 = vld [vmem:[%s3251_s9 + $0xf0] sm:$0xff]  ;;  %v895_v28 = vld [vmem:[#allocation12 + $0x20] sm:$0xff]  ;;  %v894_v30 = vld [vmem:[#allocation12 + $0x18] sm:$0xff] }
 0x102   : > { %1984 = vmatpush3.msra.mxu0 %v694_v37  ;;  %2163 = vmatprep.subr.mxu1 %v900_v59  ;;  %v896_v27 = vld [vmem:[#allocation12 + $0x28] sm:$0xff]  ;;  %v893_v31 = vld [vmem:[#allocation12 + $0x10] sm:$0xff]  ;;  %v891_v33 = vld [vmem:[#allocation12] sm:$0xff] }
 0x103   : > { %1985 = vmatprep.subr.mxu0 %v709_v41  ;;  %2164 = vmatpush3.msra.mxu1 %v900_v59  ;;  %v892_v32 = vld [vmem:[#allocation12 + $0x8] sm:$0xff]  ;;  %v3357_v34 = vld [vmem:[#allocation16 + $0x18] sm:$0xff] }
 0x104   : > { %1986 = vmatpush3.msra.mxu0 %v693_v42  ;;  %2165 = vmatprep.subr.mxu1 %v899_v60  ;;  %v3360_v38 = vld [vmem:[#allocation11] ss:$0 sm:$0xff] }
 0x105   : > { %1987 = vmatprep.subr.mxu0 %v708_v44  ;;  %2166 = vmatpush3.msra.mxu1 %v899_v60 }
 0x106   : > { %1988 = vmatpush3.msra.mxu0 %v692_v47  ;;  %2167 = vmatprep.subr.mxu1 %v898_v63 }
 0x107   : > { %1989 = vmatprep.subr.mxu0 %v707_v48  ;;  %2168 = vmatpush3.msra.mxu1 %v898_v63 }
 0x108   : > { %1990 = vmatpush3.msra.mxu0 %v691_v50  ;;  %2169 = vmatprep.subr.mxu1 %v897_v0 }
 0x109   : > { %795 = vmatmul.mubr.f32.vlgmr.msra.gmra.mxu0 %v659_v52  ;;  %2170 = vmatpush3.msra.mxu1 %v897_v0 }
 0x10a   : > { %799 = vmatprep.mubr.f32.mxu0 %v662_v53  ;;  %2171 = vmatprep.subr.mxu1 %v896_v27  ;;  %v3366_v53 = vld [vmem:[#allocation16 + $0x10] sm:$0xff] }
 0x10b   : > { %2172 = vmatpush3.msra.mxu1 %v896_v27 }
 0x10c   : > { %2173 = vmatprep.subr.mxu1 %v895_v28 }
 0x10d   : > { %800 = vmatmul.mubr.f32.gmra.mxu0 %v661_v57  ;;  %2174 = vmatpush3.msra.mxu1 %v895_v28  ;;  %v3372_v57 = vld [vmem:[#allocation16 + $0x8] sm:$0xff] }
 0x10e   : > { %804 = vmatprep.mubr.f32.mxu0 %v664_v58  ;;  %2175 = vmatprep.subr.mxu1 %v894_v30 }
 0x10f   : > { %2176 = vmatpush3.msra.mxu1 %v894_v30 }
 0x110   : > { %2177 = vmatprep.subr.mxu1 %v893_v31 }
 0x111   : > { %805 = vmatmul.mubr.f32.gmra.mxu0 %v663_v61  ;;  %2178 = vmatpush3.msra.mxu1 %v893_v31  ;;  %v3376_v61 = vld [vmem:[#allocation16] sm:$0xff] }
 0x112   : > { %809 = vmatprep.mubr.f32.mxu0 %v666_v62  ;;  %2179 = vmatprep.subr.mxu1 %v892_v32 }
 0x113   : > { %2180 = vmatpush3.msra.mxu1 %v892_v32 }
 0x114   : > { %2181 = vmatprep.subr.mxu1 %v891_v33 }
 0x115   : > { %810 = vmatmul.mubr.f32.gmra.mxu0 %v665_v1  ;;  %2182 = vmatpush3.msra.mxu1 %v891_v33 }
 0x116   : > { %814 = vmatprep.mubr.f32.mxu0 %v668_v2  ;;  %2207 = vmatprep.subr.mxu1 %v3357_v34 }
 0x119   : > { %815 = vmatmul.mubr.f32.gmra.mxu0 %v667_v3 }
 0x11a   : > { %819 = vmatprep.mubr.f32.mxu0 %v670_v4 }
 0x11d   : > { %820 = vmatmul.mubr.f32.gmra.mxu0 %v669_v5 }
 0x11e   : > { %824 = vmatprep.mubr.f32.mxu0 %v672_v6 }
 0x121   : > { %825 = vmatmul.mubr.f32.gmra.mxu0 %v671_v7 }
 0x122   : > { %829 = vmatprep.mubr.f32.mxu0 %v674_v8 }
 0x125   : > { %830 = vmatmul.mubr.f32.gmra.mxu0 %v673_v9 }
 0x126   : > { %834 = vmatprep.mubr.f32.mxu0 %v676_v10 }
 0x129   : > { %835 = vmatmul.mubr.f32.gmra.mxu0 %v675_v11 }
 0x12a   : > { %839 = vmatprep.mubr.f32.mxu0 %v678_v12 }
 0x12d   : > { %840 = vmatmul.mubr.f32.gmra.mxu0 %v677_v13 }
 0x12e   : > { %844 = vmatprep.mubr.f32.mxu0 %v680_v14 }
 0x131   : > { %845 = vmatmul.mubr.f32.gmra.mxu0 %v679_v15 }
 0x132   : > { %849 = vmatprep.mubr.f32.mxu0 %v682_v16 }
 0x135   : > { %850 = vmatmul.mubr.f32.gmra.mxu0 %v681_v17 }
 0x136   : > { %854 = vmatprep.mubr.f32.mxu0 %v684_v18 }
 0x139   : > { %855 = vmatmul.mubr.f32.gmra.mxu0 %v683_v19 }
 0x13a   : > { %859 = vmatprep.mubr.f32.mxu0 %v686_v20 }
 0x13d   : > { %860 = vmatmul.mubr.f32.gmra.mxu0 %v685_v21 }
 0x13e   : > { %864 = vmatprep.mubr.f32.mxu0 %v688_v22 }
 0x141   : > { %865 = vmatmul.mubr.f32.gmra.mxu0 %v687_v23 }
 0x142   : > { %869 = vmatprep.mubr.f32.mxu0 %v690_v24 }
 0x145   : > { %870 = vmatmul.mubr.f32.gmra.mxu0 %v689_v25 }
 0x16f   : > { %v3363_v47 = vpop.trf.xlu0 }
 0x173   : > { %v3369_v56 = vpop.trf.xlu0 }
 0x177   : > { %v3382_v3 = vpop.trf.xlu0 }
 0x17b   : > { %v3387_v11 = vpop.trf.xlu0 }
 0x17f   : > { %v3390_v20 = vpop.trf.xlu0 }
 0x183   : > { %v1123_v30 = vpop.trf.xlu0 }
 0x1c9   : > { %v1991_v36 = vpop.f32.mrf.mxu0 }
 0x1cb   : > { %v1992_v37 = vpop.f32.mrf.mxu0 }
 0x1cc   : > { %v1993_v39 = vadd.f32 %v1992_v37, %v1991_v36 }
 0x1cd   : > { %v1994_v40 = vpop.f32.mrf.mxu0 }
 0x1ce   : > { %v797_v41 = vadd.f32 %v1993_v39, %v3360_v38 }
 0x1cf   : > { %v1995_v42 = vpop.f32.mrf.mxu0 }
 0x1d0   : > { %v1996_v43 = vadd.f32 %v1995_v42, %v1994_v40  ;;  %v875_v44 = vmax.f32 %v797_v41, 0.0  ;;  %v1124_v42 = vpop.trf.xlu0 }
 0x1d1   : > { %v1997_v46 = vpop.f32.mrf.mxu0 }
 0x1d2   : > { %v802_v48 = vadd.f32 %v1996_v43, %v3360_v38  ;;  %2183 = vmatprep.mubr.f32.mxu1 %v875_v44 }
 0x1d3   : > { %v1998_v49 = vpop.f32.mrf.mxu0 }
 0x1d4   : > { %v876_v50 = vmax.f32 %v802_v48, 0.0  ;;  %v1999_v51 = vadd.f32 %v1998_v49, %v1997_v46 }
 0x1d5   : > { %v2000_v52 = vpop.f32.mrf.mxu0 }
 0x1d6   : > { %v807_v54 = vadd.f32 %v1999_v51, %v3360_v38  ;;  %2184 = vmatmul.mubr.f32.vlgmr.msra.gmra.mxu1 %v876_v50 }
 0x1d7   : > { %v2001_v55 = vpop.f32.mrf.mxu0  ;;  %2208 = vmatpush3.msra.mxu1 %v3357_v34 }
 0x1d8   : > { %v877_v58 = vmax.f32 %v807_v54, 0.0  ;;  %v2002_v59 = vadd.f32 %v2001_v55, %v2000_v52  ;;  %2209 = vmatprep.subr.mxu1 %v3366_v53  ;;  %v1125_v52 = vpop.trf.xlu0 }
 0x1d9   : > { %v2003_v60 = vpop.f32.mrf.mxu0  ;;  %2210 = vmatpush3.msra.mxu1 %v3366_v53 }
 0x1da   : > { %v812_v62 = vadd.f32 %v2002_v59, %v3360_v38  ;;  %2186 = vmatprep.mubr.f32.mxu1 %v877_v58  ;;  %2211 = vmatprep.subr.mxu1 %v3372_v57 }
 0x1db   : > { %v2004_v63 = vpop.f32.mrf.mxu0  ;;  %2212 = vmatpush3.msra.mxu1 %v3372_v57 }
 0x1dc   : > { %v878_v0 = vmax.f32 %v812_v62, 0.0  ;;  %v2005_v1 = vadd.f32 %v2004_v63, %v2003_v60  ;;  %2213 = vmatprep.subr.mxu1 %v3376_v61 }
 0x1dd   : > { %v2006_v2 = vpop.f32.mrf.mxu0  ;;  %2214 = vmatpush3.msra.mxu1 %v3376_v61 }
 0x1de   : > { %v817_v4 = vadd.f32 %v2005_v1, %v3360_v38  ;;  %2187 = vmatmul.mubr.f32.gmra.mxu1 %v878_v0  ;;  %v1126_v1 = vpop.trf.xlu0 }
 0x1df   : > { %v2007_v5 = vpop.f32.mrf.mxu0 }
 0x1e0   : > { %v879_v6 = vmax.f32 %v817_v4, 0.0  ;;  %v2008_v7 = vadd.f32 %v2007_v5, %v2006_v2 }
 0x1e1   : > { %v2009_v8 = vpop.f32.mrf.mxu0 }
 0x1e2   : > { %v822_v9 = vadd.f32 %v2008_v7, %v3360_v38  ;;  %2189 = vmatprep.mubr.f32.mxu1 %v879_v6 }
 0x1e3   : > { %v2010_v10 = vpop.f32.mrf.mxu0 }
 0x1e4   : > { %v880_v12 = vmax.f32 %v822_v9, 0.0  ;;  %v2011_v13 = vadd.f32 %v2010_v10, %v2009_v8  ;;  %v1127_v10 = vpop.trf.xlu0 }
 0x1e5   : > { %v2012_v14 = vpop.f32.mrf.mxu0 }
 0x1e6   : > { %v827_v15 = vadd.f32 %v2011_v13, %v3360_v38  ;;  %2190 = vmatmul.mubr.f32.gmra.mxu1 %v880_v12 }
 0x1e7   : > { %v2013_v16 = vpop.f32.mrf.mxu0 }
 0x1e8   : > { %v881_v17 = vmax.f32 %v827_v15, 0.0  ;;  %v2014_v18 = vadd.f32 %v2013_v16, %v2012_v14  ;;  %v1128_v16 = vpop.trf.xlu0 }
 0x1e9   : > { %v2015_v19 = vpop.f32.mrf.mxu0 }
 0x1ea   : > { %v832_v21 = vadd.f32 %v2014_v18, %v3360_v38  ;;  %2192 = vmatprep.mubr.f32.mxu1 %v881_v17  ;;  %v2922_v18 = vmov 1.0  }
 0x1eb   : > { %v2016_v22 = vpop.f32.mrf.mxu0 }
 0x1ec   : > { %v882_v23 = vmax.f32 %v832_v21, 0.0  ;;  %v2017_v24 = vadd.f32 %v2016_v22, %v2015_v19  ;;  %v1129_v17 = vpop.trf.xlu0 }
 0x1ed   : > { %v2018_v25 = vpop.f32.mrf.mxu0 }
 0x1ee   : > { %v837_v27 = vadd.f32 %v2017_v24, %v3360_v38  ;;  %2193 = vmatmul.mubr.f32.gmra.mxu1 %v882_v23 }
 0x1ef   : > { %v2019_v28 = vpop.f32.mrf.mxu0 }
 0x1f0   : > { %v883_v31 = vmax.f32 %v837_v27, 0.0  ;;  %v2020_v32 = vadd.f32 %v2019_v28, %v2018_v25 }
 0x1f1   : > { %v2021_v33 = vpop.f32.mrf.mxu0 }
 0x1f2   : > { %v842_v36 = vadd.f32 %v2020_v32, %v3360_v38  ;;  %2195 = vmatprep.mubr.f32.mxu1 %v883_v31 }
 0x1f3   : > { %v2022_v37 = vpop.f32.mrf.mxu0 }
 0x1f4   : > { %v884_v39 = vmax.f32 %v842_v36, 0.0  ;;  %v2023_v40 = vadd.f32 %v2022_v37, %v2021_v33 }
 0x1f5   : > { %v2024_v41 = vpop.f32.mrf.mxu0 }
 0x1f6   : > { %v847_v43 = vadd.f32 %v2023_v40, %v3360_v38  ;;  %2196 = vmatmul.mubr.f32.gmra.mxu1 %v884_v39 }
 0x1f7   : > { %v2025_v44 = vpop.f32.mrf.mxu0 }
 0x1f8   : > { %v885_v46 = vmax.f32 %v847_v43, 0.0  ;;  %v2026_v48 = vadd.f32 %v2025_v44, %v2024_v41 }
 0x1f9   : > { %v2027_v49 = vpop.f32.mrf.mxu0 }
 0x1fa   : > { %v852_v50 = vadd.f32 %v2026_v48, %v3360_v38  ;;  %2198 = vmatprep.mubr.f32.mxu1 %v885_v46 }
 0x1fb   : > { %v2028_v51 = vpop.f32.mrf.mxu0 }
 0x1fc   : > { %v886_v54 = vmax.f32 %v852_v50, 0.0  ;;  %v2029_v55 = vadd.f32 %v2028_v51, %v2027_v49 }
 0x1fd   : > { %v2030_v58 = vpop.f32.mrf.mxu0 }
 0x1fe   : > { %v857_v59 = vadd.f32 %v2029_v55, %v3360_v38  ;;  %2199 = vmatmul.mubr.f32.gmra.mxu1 %v886_v54  ;;  %v3462_v54 = vld [vmem:[%s3699_s11] ss:$0 sm:$0xff] }
 0x1ff   : > { %v2031_v60 = vpop.f32.mrf.mxu0 }
 0x200   : > { %v887_v62 = vmax.f32 %v857_v59, 0.0  ;;  %v2032_v63 = vadd.f32 %v2031_v60, %v2030_v58 }
 0x201   : > { %v2033_v0 = vpop.f32.mrf.mxu0 }
 0x202   : > { %v862_v2 = vadd.f32 %v2032_v63, %v3360_v38  ;;  %2201 = vmatprep.mubr.f32.mxu1 %v887_v62 }
 0x203   : > { %v2034_v4 = vpop.f32.mrf.mxu0 }
 0x204   : > { %v888_v5 = vmax.f32 %v862_v2, 0.0  ;;  %v2035_v6 = vadd.f32 %v2034_v4, %v2033_v0 }
 0x205   : > { %v2036_v7 = vpop.f32.mrf.mxu0 }
 0x206   : > { %v867_v8 = vadd.f32 %v2035_v6, %v3360_v38  ;;  %2202 = vmatmul.mubr.f32.gmra.mxu1 %v888_v5 }
 0x207   : > { %v2037_v9 = vpop.f32.mrf.mxu0 }
 0x208   : > { %v889_v12 = vmax.f32 %v867_v8, 0.0  ;;  %v2038_v13 = vadd.f32 %v2037_v9, %v2036_v7 }
 0x20a   : > { %v872_v14 = vadd.f32 %v2038_v13, %v3360_v38  ;;  %2204 = vmatprep.mubr.f32.mxu1 %v889_v12  ;;  %v1130_v38 = vpop.trf.xlu0 }
 0x20c   : > { %v890_v15 = vmax.f32 %v872_v14, 0.0 }
 0x20e   : > { %2205 = vmatmul.mubr.f32.gmra.mxu1 %v890_v15 }
 0x20f   : > { %2215 = vmatprep.mubr.msk.f32.mxu1 %vm1134_vm4, %v3363_v47  ;;  %v1131_v47 = vpop.trf.xlu0 }
 0x212   : > { %2216 = vmatmul.mubr.msk.f32.vlgmr.msra.gmra.mxu1 %vm1134_vm4, %v3369_v56 }
 0x213   : > { %2218 = vmatprep.mubr.msk.f32.mxu1 %vm1134_vm4, %v3382_v3  ;;  %v1132_v56 = vpop.trf.xlu0 }
 0x216   : > { %2219 = vmatmul.mubr.msk.f32.gmra.mxu1 %vm1134_vm4, %v3387_v11  ;;  %v3423_v11 = vld [vmem:[%s3257_s15] ss:$0 sm:$0xff] }
 0x217   : > { %2221 = vmatprep.mubr.msk.f32.mxu1 %vm1134_vm4, %v3390_v20  ;;  %v1133_v3 = vpop.trf.xlu0  ;;  %vm1090_vm5 = vcmp.eq.s32.totalorder %v3306_v26, %v3423_v11  ;;  %vm1092_vm6 = vcmp.eq.s32.totalorder %v3319_v35, %v3423_v11  ;;  %vm1091_vm7 = vcmp.eq.s32.totalorder %v3309_v29, %v3423_v11  ;;  %vm1093_vm8 = vcmp.eq.s32.totalorder %v3323_v45, %v3423_v11 }
 0x218   : > { %2271 = vmatprep.mubr.msk.f32.mxu0 %vm1090_vm5, %v2922_v18 }
 0x21a   : > { %2222 = vmatmul.mubr.msk.f32.gmra.mxu1 %vm1134_vm4, %v1123_v30 }
 0x21b   : > { %2224 = vmatprep.mubr.msk.f32.mxu1 %vm1134_vm4, %v1124_v42 }
 0x21e   : > { %2225 = vmatmul.mubr.msk.f32.gmra.mxu1 %vm1134_vm4, %v1125_v52 }
 0x21f   : > { %2227 = vmatprep.mubr.msk.f32.mxu1 %vm1134_vm4, %v1126_v1 }
 0x222   : > { %2228 = vmatmul.mubr.msk.f32.gmra.mxu1 %vm1134_vm4, %v1127_v10 }
 0x223   : > { %2230 = vmatprep.mubr.msk.f32.mxu1 %vm1134_vm4, %v1128_v16 }
 0x226   : > { %2231 = vmatmul.mubr.msk.f32.gmra.mxu1 %vm1134_vm4, %v1129_v17 }
 0x227   : > { %2233 = vmatprep.mubr.msk.f32.mxu1 %vm1134_vm4, %v1130_v38 }
 0x22a   : > { %2234 = vmatmul.mubr.msk.f32.gmra.mxu1 %vm1134_vm4, %v1131_v47 }
 0x22b   : > { %2236 = vmatprep.mubr.msk.f32.mxu1 %vm1134_vm4, %v1132_v56 }
 0x22e   : > { %2237 = vmatmul.mubr.msk.f32.gmra.mxu1 %vm1134_vm4, %v1133_v3 }
 0x22f   : > { %2274 = vmatprep.mubr.msk.f32.mxu1 %vm1092_vm6, %v2922_v18 }
 0x296   : > { %v3431_v19 = vpop.f32.mrf.mxu1 }
 0x298   : > { %v3433_v20 = vpop.f32.mrf.mxu1 }
 0x29e   : > { %v3435_v21 = vpop.f32.mrf.mxu1 }
 0x2a0   : > { %v3437_v22 = vpop.f32.mrf.mxu1 }
 0x2a6   : > { %v3439_v23 = vpop.f32.mrf.mxu1 }
 0x2a8   : > { %v3441_v24 = vpop.f32.mrf.mxu1 }
 0x2ae   : > { %v3443_v26 = vpop.f32.mrf.mxu1 }
 0x2af   : > { %v1016_v47 = vadd.f32 %v3443_v26, %v3462_v54 }
 0x2b0   : > { %v3445_v35 = vpop.f32.mrf.mxu1 }
 0x2b6   : > { %v2197_v25 = vpop.f32.mrf.mxu1 }
 0x2b7   : > { %v1026_v13 = vadd.f32 %v2197_v25, %v3462_v54  ;;  %v1011_v25 = vadd.f32 %v3462_v54, %v3445_v35 }
 0x2b8   : > { %v1020_v27 = vpop.f32.mrf.mxu1 }
 0x2b9   : > { %v1021_v16 = vadd.f32 %v3462_v54, %v1020_v27 }
 0x2be   : > { %v2200_v28 = vpop.f32.mrf.mxu1 }
 0x2bf   : > { %v1036_v6 = vadd.f32 %v2200_v28, %v3462_v54 }
 0x2c0   : > { %v1030_v30 = vpop.f32.mrf.mxu1 }
 0x2c1   : > { %v1031_v9 = vadd.f32 %v3462_v54, %v1030_v30  ;;  %v1006_v30 = vadd.f32 %v3439_v23, %v3462_v54 }
 0x2c6   : > { %v2203_v31 = vpop.f32.mrf.mxu1 }
 0x2c7   : > { %v1046_v60 = vadd.f32 %v2203_v31, %v3462_v54 }
 0x2c8   : > { %v1040_v32 = vpop.f32.mrf.mxu1 }
 0x2c9   : > { %v1041_v1 = vadd.f32 %v3462_v54, %v1040_v32  ;;  %v1001_v32 = vadd.f32 %v3462_v54, %v3441_v24  ;;  %v991_v24 = vadd.f32 %v3462_v54, %v3437_v22  ;;  %v981_v22 = vadd.f32 %v3462_v54, %v3433_v20 }
 0x2ce   : > { %v2206_v33 = vpop.f32.mrf.mxu1 }
 0x2cf   : > { %v1056_v58 = vadd.f32 %v2206_v33, %v3462_v54 }
 0x2d0   : > { %v1050_v36 = vpop.f32.mrf.mxu1 }
 0x2d1   : > { %v1051_v62 = vadd.f32 %v3462_v54, %v1050_v36  ;;  %v996_v36 = vadd.f32 %v3435_v21, %v3462_v54  ;;  %v986_v21 = vadd.f32 %v3431_v19, %v3462_v54  ;;  %v1344_v54 = vld [vmem:[#allocation2 + $0x10] sm:$0xff] }
 0x2d2   : > { %v3447_v37 = vpop.f32.mrf.mxu1 }
 0x2d4   : > { %v3449_v39 = vpop.f32.mrf.mxu1 }
 0x2d6   : > { %v3451_v40 = vpop.f32.mrf.mxu1 }
 0x2d8   : > { %v3453_v41 = vpop.f32.mrf.mxu1 }
 0x2da   : > { %v3455_v42 = vpop.f32.mrf.mxu1 }
 0x2db   : > { %v1275_v35 = vadd.f32 %v3455_v42, %v1006_v30  ;;  %v1265_v42 = vadd.f32 %v3451_v40, %v996_v36  ;;  %v1255_v40 = vadd.f32 %v3447_v37, %v986_v21  ;;  %v1345_v37 = vld [vmem:[#allocation2] sm:$0xff] }
 0x2dc   : > { %v3457_v43 = vpop.f32.mrf.mxu1 }
 0x2dd   : > { %v1270_v23 = vadd.f32 %v3457_v43, %v1001_v32  ;;  %v1260_v43 = vadd.f32 %v3453_v41, %v991_v24  ;;  %v1329_v41 = vmax.f32 %v1255_v40, 0.0 }
 0x2de   : > { %v2226_v44 = vpop.f32.mrf.mxu1 }
 0x2df   : > { %v1285_v28 = vadd.f32 %v2226_v44, %v1016_v47  ;;  %v1330_v19 = vmax.f32 %v1260_v43, 0.0 }
 0x2e0   : > { %v1279_v46 = vpop.f32.mrf.mxu1 }
 0x2e1   : > { %v1280_v31 = vadd.f32 %v1279_v46, %v1011_v25  ;;  %v1335_v33 = vmax.f32 %v1285_v28, 0.0  ;;  %v1333_v46 = vmax.f32 %v1275_v35, 0.0 }
 0x2e2   : > { %v2229_v48 = vpop.f32.mrf.mxu1 }
 0x2e3   : > { %v1295_v17 = vadd.f32 %v2229_v48, %v1026_v13  ;;  %v1334_v44 = vmax.f32 %v1280_v31, 0.0  ;;  %v1332_v48 = vmax.f32 %v1270_v23, 0.0 }
 0x2e4   : > { %v1289_v49 = vpop.f32.mrf.mxu1 }
 0x2e5   : > { %v1290_v56 = vadd.f32 %v1289_v49, %v1021_v16  ;;  %v1337_v27 = vmax.f32 %v1295_v17, 0.0  ;;  %v1331_v49 = vmax.f32 %v1265_v42, 0.0 }
 0x2e6   : > { %v2232_v50 = vpop.f32.mrf.mxu1 }
 0x2e7   : > { %v1305_v10 = vadd.f32 %v2232_v50, %v1036_v6  ;;  %v1336_v26 = vmax.f32 %v1290_v56, 0.0  ;;  %v1250_v50 = vadd.f32 %v3449_v39, %v981_v22  ;;  %v1347_v39 = vld [vmem:[#allocation2 + $0x8] sm:$0xff] }
 0x2e8   : > { %v1299_v51 = vpop.f32.mrf.mxu1 }
 0x2e9   : > { %v1300_v14 = vadd.f32 %v1299_v51, %v1031_v9  ;;  %v1339_v38 = vmax.f32 %v1305_v10, 0.0  ;;  %v1328_v20 = vmax.f32 %v1250_v50, 0.0 }
 0x2ea   : > { %v2235_v52 = vpop.f32.mrf.mxu1 }
 0x2eb   : > { %v1315_v2 = vadd.f32 %v2235_v52, %v1046_v60  ;;  %v1338_v3 = vmax.f32 %v1300_v14, 0.0 }
 0x2ec   : > { %v1309_v55 = vpop.f32.mrf.mxu1 }
 0x2ed   : > { %v1310_v7 = vadd.f32 %v1309_v55, %v1041_v1  ;;  %v1341_v12 = vmax.f32 %v1315_v2, 0.0  ;;  %v1346_v55 = vld [vmem:[#allocation2 + $0x18] sm:$0xff] }
 0x2ee   : > { %v2238_v59 = vpop.f32.mrf.mxu1 }
 0x2ef   : > { %v1325_v63 = vadd.f32 %v2238_v59, %v1056_v58  ;;  %v1340_v15 = vmax.f32 %v1310_v7, 0.0 }
 0x2f0   : > { %v1319_v0 = vpop.f32.mrf.mxu1 }
 0x2f1   : > { %v1343_v4 = vmax.f32 %v1325_v63, 0.0  ;;  %v1320_v5 = vadd.f32 %v1319_v0, %v1051_v62 }
 0x2f3   : > { %v1342_v8 = vmax.f32 %v1320_v5, 0.0  ;;  %2239 = vmatprep.subr.mxu0 %v1343_v4  ;;  %2353 = vmatprep.subr.mxu1 %v1343_v4 }
 0x2f4   : > { %2240 = vmatpush3.msra.mxu0 %v1343_v4  ;;  %2369 = vmatpush3.msra.mxu1 %v1343_v4 }
 0x2f5   : > { %2241 = vmatprep.subr.mxu0 %v1342_v8  ;;  %2354 = vmatprep.subr.mxu1 %v1342_v8 }
 0x2f6   : > { %2242 = vmatpush3.msra.mxu0 %v1342_v8  ;;  %2370 = vmatpush3.msra.mxu1 %v1342_v8 }
 0x2f7   : > { %2243 = vmatprep.subr.mxu0 %v1341_v12  ;;  %2355 = vmatprep.subr.mxu1 %v1341_v12 }
 0x2f8   : > { %2244 = vmatpush3.msra.mxu0 %v1341_v12  ;;  %2371 = vmatpush3.msra.mxu1 %v1341_v12 }
 0x2f9   : > { %2245 = vmatprep.subr.mxu0 %v1340_v15  ;;  %2356 = vmatprep.subr.mxu1 %v1340_v15 }
 0x2fa   : > { %2246 = vmatpush3.msra.mxu0 %v1340_v15  ;;  %2372 = vmatpush3.msra.mxu1 %v1340_v15 }
 0x2fb   : > { %2247 = vmatprep.subr.mxu0 %v1339_v38  ;;  %2357 = vmatprep.subr.mxu1 %v1339_v38 }
 0x2fc   : > { %2248 = vmatpush3.msra.mxu0 %v1339_v38  ;;  %2373 = vmatpush3.msra.mxu1 %v1339_v38 }
 0x2fd   : > { %2249 = vmatprep.subr.mxu0 %v1338_v3  ;;  %2358 = vmatprep.subr.mxu1 %v1338_v3 }
 0x2fe   : > { %2250 = vmatpush3.msra.mxu0 %v1338_v3  ;;  %2374 = vmatpush3.msra.mxu1 %v1338_v3 }
 0x2ff   : > { %2251 = vmatprep.subr.mxu0 %v1337_v27  ;;  %2359 = vmatprep.subr.mxu1 %v1337_v27 }
 0x300   : > { %2252 = vmatpush3.msra.mxu0 %v1337_v27  ;;  %2375 = vmatpush3.msra.mxu1 %v1337_v27 }
 0x301   : > { %2253 = vmatprep.subr.mxu0 %v1336_v26  ;;  %2360 = vmatprep.subr.mxu1 %v1336_v26 }
 0x302   : > { %2254 = vmatpush3.msra.mxu0 %v1336_v26  ;;  %2376 = vmatpush3.msra.mxu1 %v1336_v26 }
 0x303   : > { %2255 = vmatprep.subr.mxu0 %v1335_v33  ;;  %2361 = vmatprep.subr.mxu1 %v1335_v33 }
 0x304   : > { %2256 = vmatpush3.msra.mxu0 %v1335_v33  ;;  %2377 = vmatpush3.msra.mxu1 %v1335_v33 }
 0x305   : > { %2257 = vmatprep.subr.mxu0 %v1334_v44  ;;  %2362 = vmatprep.subr.mxu1 %v1334_v44 }
 0x306   : > { %2258 = vmatpush3.msra.mxu0 %v1334_v44  ;;  %2378 = vmatpush3.msra.mxu1 %v1334_v44 }
 0x307   : > { %2259 = vmatprep.subr.mxu0 %v1333_v46  ;;  %2363 = vmatprep.subr.mxu1 %v1333_v46 }
 0x308   : > { %2260 = vmatpush3.msra.mxu0 %v1333_v46  ;;  %2379 = vmatpush3.msra.mxu1 %v1333_v46 }
 0x309   : > { %2261 = vmatprep.subr.mxu0 %v1332_v48  ;;  %2364 = vmatprep.subr.mxu1 %v1332_v48 }
 0x30a   : > { %2262 = vmatpush3.msra.mxu0 %v1332_v48  ;;  %2380 = vmatpush3.msra.mxu1 %v1332_v48 }
 0x30b   : > { %2263 = vmatprep.subr.mxu0 %v1331_v49  ;;  %2365 = vmatprep.subr.mxu1 %v1331_v49 }
 0x30c   : > { %2264 = vmatpush3.msra.mxu0 %v1331_v49  ;;  %2381 = vmatpush3.msra.mxu1 %v1331_v49 }
 0x30d   : > { %2265 = vmatprep.subr.mxu0 %v1330_v19  ;;  %2366 = vmatprep.subr.mxu1 %v1330_v19 }
 0x30e   : > { %2266 = vmatpush3.msra.mxu0 %v1330_v19  ;;  %2382 = vmatpush3.msra.mxu1 %v1330_v19 }
 0x30f   : > { %2267 = vmatprep.subr.mxu0 %v1329_v41  ;;  %2367 = vmatprep.subr.mxu1 %v1329_v41 }
 0x310   : > { %2268 = vmatpush3.msra.mxu0 %v1329_v41  ;;  %2383 = vmatpush3.msra.mxu1 %v1329_v41 }
 0x311   : > { %2269 = vmatprep.subr.mxu0 %v1328_v20  ;;  %2368 = vmatprep.subr.mxu1 %v1328_v20 }
 0x312   : > { %2270 = vmatpush3.msra.mxu0 %v1328_v20  ;;  %2384 = vmatpush3.msra.mxu1 %v1328_v20 }
 0x313   : > { %2272 = vmatmul.mubr.msk.f32.vlgmr.msra.gmra.mxu0 %vm1091_vm7, %v2922_v18  ;;  %2275 = vmatmul.mubr.msk.f32.vlgmr.msra.gmra.mxu1 %vm1093_vm8, %v2922_v18 }
 0x3d3   : > { %v2273_v51 = vpop.f32.mrf.mxu0  ;;  %v2276_v52 = vpop.f32.mrf.mxu1 }
 0x3d4   : > { %v1434_v29 = vadd.f32 %v2273_v51, %v1345_v37  ;;  %v1436_v58 = vadd.f32 %v2276_v52, %v1347_v39  ;;  %1444 = sbr.rel (%p1948_p4) target bundleno = 1425 (0x591), region = 112 }
 0x3d5   : > { %v1414_v59 = vpop.f32.mrf.mxu0  ;;  %v1424_v45 = vpop.f32.mrf.mxu1 }
 0x3d6   : > { %1438 = vst [vmem:[#allocation2] sm:$0xff] %v1434_v29  ;;  %1440 = vst [vmem:[#allocation2 + $0x8] sm:$0xff] %v1436_v58  ;;  %v1433_v11 = vadd.f32 %v1414_v59, %v1344_v54  ;;  %v1435_v60 = vadd.f32 %v1424_v45, %v1346_v55 }
 0x3d8   : > { %1437 = vst [vmem:[#allocation2 + $0x10] sm:$0xff] %v1433_v11  ;;  %1439 = vst [vmem:[#allocation2 + $0x18] sm:$0xff] %v1435_v60 }
 0x3d9   : > { %v1468_v18 = vld [vmem:[%s3268_s1 + $0x78] sm:$0xff]  ;;  %v1467_v62 = vld [vmem:[%s3268_s1 + $0x70] sm:$0xff]  ;;  %v1466_v63 = vld [vmem:[%s3268_s1 + $0x68] sm:$0xff] }
 0x3da   : > { %2277 = vmatprep.subr.mxu0 %v1468_v18  ;;  %v1465_v0 = vld [vmem:[%s3268_s1 + $0x60] sm:$0xff]  ;;  %v1464_v2 = vld [vmem:[%s3268_s1 + $0x58] sm:$0xff]  ;;  %v1484_v6 = vld [vmem:[%s3274_s28 + $0x70] sm:$0xff] }
 0x3db   : > { %2278 = vmatpush3.msra.mxu0 %v1468_v18  ;;  %v1485_v5 = vld [vmem:[%s3274_s28 + $0x78] sm:$0xff]  ;;  %v1463_v7 = vld [vmem:[%s3268_s1 + $0x50] sm:$0xff]  ;;  %v1483_v8 = vld [vmem:[%s3274_s28 + $0x68] sm:$0xff] }
 0x3dc   : > { %2279 = vmatprep.subr.mxu0 %v1467_v62  ;;  %2315 = vmatprep.subr.mxu1 %v1485_v5  ;;  %v1462_v9 = vld [vmem:[%s3268_s1 + $0x48] sm:$0xff]  ;;  %v1482_v10 = vld [vmem:[%s3274_s28 + $0x60] sm:$0xff]  ;;  %v1481_v13 = vld [vmem:[%s3274_s28 + $0x58] sm:$0xff] }
 0x3dd   : > { %2280 = vmatpush3.msra.mxu0 %v1467_v62  ;;  %2316 = vmatpush3.msra.mxu1 %v1485_v5  ;;  %v1461_v12 = vld [vmem:[%s3268_s1 + $0x40] sm:$0xff]  ;;  %v1460_v14 = vld [vmem:[%s3268_s1 + $0x38] sm:$0xff]  ;;  %v1480_v15 = vld [vmem:[%s3274_s28 + $0x50] sm:$0xff] }
 0x3de   : > { %2281 = vmatprep.subr.mxu0 %v1466_v63  ;;  %2317 = vmatprep.subr.mxu1 %v1484_v6  ;;  %v1459_v16 = vld [vmem:[%s3268_s1 + $0x30] sm:$0xff]  ;;  %v1479_v17 = vld [vmem:[%s3274_s28 + $0x48] sm:$0xff]  ;;  %v1478_v47 = vld [vmem:[%s3274_s28 + $0x40] sm:$0xff] }
 0x3df   : > { %v1445_v1 = vld [vmem:[#allocation2 + $0x10] sm:$0xff]  ;;  %2282 = vmatpush3.msra.mxu0 %v1466_v63  ;;  %2318 = vmatpush3.msra.mxu1 %v1484_v6  ;;  %v1457_v56 = vld [vmem:[%s3268_s1 + $0x20] sm:$0xff]  ;;  %v1477_v3 = vld [vmem:[%s3274_s28 + $0x38] sm:$0xff] }
 0x3e0   : > { %v1449_v4 = vadd.f32 %v1445_v1, %v3376_v61  ;;  %2283 = vmatprep.subr.mxu0 %v1465_v0  ;;  %2319 = vmatprep.subr.mxu1 %v1483_v8  ;;  %v1458_v38 = vld [vmem:[%s3268_s1 + $0x28] sm:$0xff]  ;;  %v1456_v25 = vld [vmem:[%s3268_s1 + $0x18] sm:$0xff]  ;;  %v1476_v28 = vld [vmem:[%s3274_s28 + $0x30] sm:$0xff] }
 0x3e1   : > { %2284 = vmatpush3.msra.mxu0 %v1465_v0  ;;  %2320 = vmatpush3.msra.mxu1 %v1483_v8  ;;  %v1455_v27 = vld [vmem:[%s3268_s1 + $0x10] sm:$0xff]  ;;  %v1475_v30 = vld [vmem:[%s3274_s28 + $0x28] sm:$0xff]  ;;  %v1446_v26 = vld [vmem:[#allocation2] sm:$0xff] }
 0x3e2   : > { %2309 = vmatprep.mubr.f32.mxu0 %v1449_v4  ;;  %2285 = vmatprep.subr.mxu0 %v1464_v2  ;;  %v1454_v31 = vld [vmem:[%s3268_s1 + $0x8] sm:$0xff]  ;;  %v1447_v32 = vld [vmem:[#allocation2 + $0x18] sm:$0xff]  ;;  %v1474_v35 = vld [vmem:[%s3274_s28 + $0x20] sm:$0xff]  ;;  %v1450_v36 = vadd.f32 %v1446_v26, %v3372_v57 }
 0x3e3   : > { %2286 = vmatpush3.msra.mxu0 %v1464_v2  ;;  %2321 = vmatprep.subr.mxu1 %v1482_v10  ;;  %v1453_v33 = vld [vmem:[%s3268_s1] sm:$0xff]  ;;  %v1451_v23 = vadd.f32 %v1447_v32, %v3366_v53  ;;  %v1473_v42 = vld [vmem:[%s3274_s28 + $0x18] sm:$0xff]  ;;  %v1472_v46 = vld [vmem:[%s3274_s28 + $0x10] sm:$0xff] }
 0x3e4   : > { %2287 = vmatprep.subr.mxu0 %v1463_v7  ;;  %2322 = vmatpush3.msra.mxu1 %v1482_v10  ;;  %v1448_v44 = vld [vmem:[#allocation2 + $0x8] sm:$0xff]  ;;  %v1949_v48 = vld [vmem:[%s634_s2] ss:$0 sm:$0xff] }
 0x3e5   : > { %2288 = vmatpush3.msra.mxu0 %v1463_v7  ;;  %2323 = vmatprep.subr.mxu1 %v1481_v13  ;;  %v1452_v24 = vadd.f32 %v1448_v44, %v3357_v34  ;;  %v1471_v21 = vld [vmem:[%s3274_s28 + $0x8] sm:$0xff]  ;;  %v1470_v43 = vld [vmem:[%s3274_s28] sm:$0xff]  ;;  %s1678_s28 = scalar_select %p632_p3, 1, 0  ;;  %v1950_v55 = vld [vmem:[%s637_s3] ss:$0 sm:$0xff] }
 0x3e6   : > { %2289 = vmatprep.subr.mxu0 %v1462_v9  ;;  %2324 = vmatpush3.msra.mxu1 %v1481_v13 }
 0x3e7   : > { %2290 = vmatpush3.msra.mxu0 %v1462_v9  ;;  %2325 = vmatprep.subr.mxu1 %v1480_v15  ;;  %v1679_v29 = vstv %s1678_s28 }
 0x3e8   : > { %2291 = vmatprep.subr.mxu0 %v1461_v12  ;;  %2326 = vmatpush3.msra.mxu1 %v1480_v15  ;;  %vm3549_vm9 = vcmp.eq.s32.totalorder %v1679_v29, 1 }
 0x3e9   : > { %2292 = vmatpush3.msra.mxu0 %v1461_v12  ;;  %2327 = vmatprep.subr.mxu1 %v1479_v17 }
 0x3ea   : > { %2293 = vmatprep.subr.mxu0 %v1460_v14  ;;  %2328 = vmatpush3.msra.mxu1 %v1479_v17 }
 0x3eb   : > { %2294 = vmatpush3.msra.mxu0 %v1460_v14  ;;  %2329 = vmatprep.subr.mxu1 %v1478_v47 }
 0x3ec   : > { %2295 = vmatprep.subr.mxu0 %v1459_v16  ;;  %2330 = vmatpush3.msra.mxu1 %v1478_v47 }
 0x3ed   : > { %2296 = vmatpush3.msra.mxu0 %v1459_v16  ;;  %2331 = vmatprep.subr.mxu1 %v1477_v3 }
 0x3ee   : > { %2297 = vmatprep.subr.mxu0 %v1458_v38  ;;  %2332 = vmatpush3.msra.mxu1 %v1477_v3 }
 0x3ef   : > { %2298 = vmatpush3.msra.mxu0 %v1458_v38  ;;  %2333 = vmatprep.subr.mxu1 %v1476_v28 }
 0x3f0   : > { %2299 = vmatprep.subr.mxu0 %v1457_v56  ;;  %2334 = vmatpush3.msra.mxu1 %v1476_v28 }
 0x3f1   : > { %2300 = vmatpush3.msra.mxu0 %v1457_v56  ;;  %2335 = vmatprep.subr.mxu1 %v1475_v30 }
 0x3f2   : > { %2301 = vmatprep.subr.mxu0 %v1456_v25  ;;  %2336 = vmatpush3.msra.mxu1 %v1475_v30 }
 0x3f3   : > { %2302 = vmatpush3.msra.mxu0 %v1456_v25  ;;  %2337 = vmatprep.subr.mxu1 %v1474_v35 }
 0x3f4   : > { %2303 = vmatprep.subr.mxu0 %v1455_v27  ;;  %2338 = vmatpush3.msra.mxu1 %v1474_v35 }
 0x3f5   : > { %2304 = vmatpush3.msra.mxu0 %v1455_v27  ;;  %2339 = vmatprep.subr.mxu1 %v1473_v42 }
 0x3f6   : > { %2305 = vmatprep.subr.mxu0 %v1454_v31  ;;  %2340 = vmatpush3.msra.mxu1 %v1473_v42 }
 0x3f7   : > { %2306 = vmatpush3.msra.mxu0 %v1454_v31  ;;  %2341 = vmatprep.subr.mxu1 %v1472_v46 }
 0x3f8   : > { %2307 = vmatprep.subr.mxu0 %v1453_v33  ;;  %2342 = vmatpush3.msra.mxu1 %v1472_v46 }
 0x3f9   : > { %2308 = vmatpush3.msra.mxu0 %v1453_v33  ;;  %2343 = vmatprep.subr.mxu1 %v1471_v21 }
 0x3fa   : > { %2310 = vmatmul.mubr.f32.vlgmr.msra.gmra.mxu0 %v1450_v36  ;;  %2344 = vmatpush3.msra.mxu1 %v1471_v21 }
 0x3fb   : > { %2312 = vmatprep.mubr.f32.mxu0 %v1451_v23  ;;  %2345 = vmatprep.subr.mxu1 %v1470_v43 }
 0x3fc   : > { %2346 = vmatpush3.msra.mxu1 %v1470_v43 }
 0x3fe   : > { %2313 = vmatmul.mubr.f32.gmra.mxu0 %v1452_v24 }
 0x4ba   : > { %v2311_v22 = vpop.f32.mrf.mxu0 }
 0x4bb   : > { %v1565_v40 = vadd.f32 %v2311_v22, %v1949_v48 }
 0x4bc   : > { %v1559_v49 = vpop.f32.mrf.mxu0 }
 0x4bd   : > { %v1560_v50 = vadd.f32 %v1949_v48, %v1559_v49  ;;  %v1579_v20 = vmax.f32 %v1565_v40, 0.0 }
 0x4be   : > { %v2314_v19 = vpop.f32.mrf.mxu0 }
 0x4bf   : > { %v1578_v41 = vmax.f32 %v1560_v50, 0.0  ;;  %v1575_v37 = vadd.f32 %v2314_v19, %v1949_v48 }
 0x4c0   : > { %v1569_v39 = vpop.f32.mrf.mxu0 }
 0x4c1   : > { %v1570_v51 = vadd.f32 %v1949_v48, %v1569_v39  ;;  %2347 = vmatprep.mubr.f32.mxu1 %v1578_v41  ;;  %v1581_v54 = vmax.f32 %v1575_v37, 0.0 }
 0x4c2   : > { %2348 = vmatmul.mubr.f32.vlgmr.msra.gmra.mxu1 %v1579_v20 }
 0x4c3   : > { %v1580_v52 = vmax.f32 %v1570_v51, 0.0 }
 0x4c5   : > { %2350 = vmatprep.mubr.f32.mxu1 %v1580_v52 }
 0x4c6   : > { %2351 = vmatmul.mubr.f32.gmra.mxu1 %v1581_v54 }
 0x582   : > { %v2349_v58 = vpop.f32.mrf.mxu1 }
 0x583   : > { %v1660_v59 = vadd.f32 %v2349_v58, %v1950_v55 }
 0x584   : > { %v1654_v11 = vpop.f32.mrf.mxu1 }
 0x585   : > { %v1675_v60 = vmax.f32 %v1660_v59, 0.0  ;;  %v1655_v18 = vadd.f32 %v1950_v55, %v1654_v11 }
 0x586   : > { %v2352_v62 = vpop.f32.mrf.mxu1 }
 0x587   : > { %v1682_v63 = vsel %vm3549_vm9, %v1675_v60, %v1660_v59  ;;  %v1674_v0 = vmax.f32 %v1655_v18, 0.0  ;;  %v1670_v1 = vadd.f32 %v2352_v62, %v1950_v55 }
 0x588   : > { %v1686_v2 = vadd.f32 %v1682_v63, %v3372_v57  ;;  %v1664_v4 = vpop.f32.mrf.mxu1 }
 0x589   : > { %v1681_v5 = vsel %vm3549_vm9, %v1674_v0, %v1655_v18  ;;  %v1677_v6 = vmax.f32 %v1670_v1, 0.0  ;;  %v1665_v7 = vadd.f32 %v1950_v55, %v1664_v4 }
 0x58a   : > { %1690 = vst [vmem:[#allocation16 + $0x8] sm:$0xff] %v1686_v2  ;;  %v1685_v8 = vadd.f32 %v1681_v5, %v3376_v61 }
 0x58b   : > { %v1684_v9 = vsel %vm3549_vm9, %v1677_v6, %v1670_v1  ;;  %v1676_v10 = vmax.f32 %v1665_v7, 0.0 }
 0x58c   : > { %1689 = vst [vmem:[#allocation16] sm:$0xff] %v1685_v8  ;;  %v1688_v12 = vadd.f32 %v1684_v9, %v3357_v34 }
 0x58d   : > { %v1683_v13 = vsel %vm3549_vm9, %v1676_v10, %v1665_v7 }
 0x58e   : > { %1692 = vst [vmem:[#allocation16 + $0x18] sm:$0xff] %v1688_v12  ;;  %v1687_v57 = vadd.f32 %v1683_v13, %v3366_v53 }
 0x590   : > { %1691 = vst [vmem:[#allocation16 + $0x10] sm:$0xff] %v1687_v57 }
 0x591 PF: > { %p2448_p10 = scmp.eq.s32.totalorder %s3096_s7, 8  ;;  %s2923_s3 = smov [#allocation16]  }
 0x592   : > { %s1699_s25 = sshll.u32 %s2923_s3, 4  ;;  %s1700_s25 = int_to_ptr.vmem [resolvable:$true] %s1699_s25 }
 0x593   : > { %s2768_s16 = scalar_lea.vmem %s1700_s25, 512  ;;  %p2775_p12 = scmp.lt.s32.totalorder %s1700_s25, %s1700_s25 }
 0x594   : > { %p2769_p11 = scmp.ne.s32.totalorder %s1700_s25, %s2768_s16  ;;  %p2776_p1 = scmp.lt.s32.totalorder %s2768_s16, %s2768_s16 }
 0x596   : > { %p2770_p6 = pnand %p2769_p11, %p2448_p10  ;;  %p2777_p9 = por %p2776_p1, %p2775_p12 }
 0x598   : > { %p2771_p0 = pneg %p2770_p6 }
 0x59a   : > { %p2778_p2 = pnand %p2777_p9, %p2771_p0 }
 0x59c   : > { %2781 = shalt.err (!%p2778_p2)
}
 0x59d   : > { %s2924_s18 = smov 128   ;;  %s2925_s20 = smov 8  }
 0x59e   : > { %s3706_s15 = sld [smem:[#allocation39_spill]] }
 0x5a4   : > { %2410 = dma.vmem_to_hbm [thread:$0]  (%p2448_p10), %s1700_s25, 512, %s3706_s15, [#allocation5], %s2924_s18, %s2924_s18, %s2925_s20  }
 0x5a5   : > { %2861 = dma.done.wait (%p2448_p10), [#allocation5], 512  }
 0x5a6   : > { %2863 = vsyncadd (%p2448_p10), [#allocation5], 4294966784 }
 0x5a7 PF: > { %s29_s13 = sadd.s32 1, %s2906_s13   ;;  %s3707_s24 = sld [smem:[#allocation24_spill]] }
 0x5a8   : > { %p26_p3 = scmp.ge.s32.totalorder %s29_s13, 11   ;;  %s3708_s11 = sld [smem:[#allocation28_spill]] }
 0x5a9   : > { %s3709_s1 = sld [smem:[#allocation27_spill]]  ;;  %s3710_s21 = smov %s2870_s22 }
 0x5aa   : > { %s3711_s22 = smov %s2874_s23  ;;  %s3712_s23 = smov %s3213_s17 }
 0x5ab   : > { %s3713_s25 = smov %s2886_s26  ;;  %s3715_s27 = smov %s2898_s29 }
 0x5ac   : > { %s3716_s28 = smov %s2902_s30  ;;  %s3718_s30 = smov %s3724_s14 }
 0x5ad   :  { %28 = sbr.rel (!%p26_p3) target bundleno = 21 (0x15), region = 176 }
 0x5ae   : > { %s3714_s26 = smov %s3708_s11 }
 0x5af   : > { %s3717_s29 = smov %s3709_s1 }
 0x5b2   :  { %1715 = vsyncpa [#allocation4], 1 }
 0x5b3   :  { %1717 = vsyncpa [#allocation4 + $0x1], 1 }
 0x5b4   :  { %1718 = vsyncpa [#allocation7], 1 }
 0x5b5   :  { %1720 = vsyncpa [#allocation7 + $0x1], 1 }
 0x5b6   :  { %1721 = vsyncpa [#allocation10], 1 }
 0x5b7   :  { %1722 = vsyncpa [#allocation13], 1 }
 0x5b8   :  { %1723 = vsyncpa [#allocation5], 1 }
 0x5b9   :  { %1725 = vsyncpa [#allocation5 + $0x1], 1 }

</bundles_post_ra>
